<compile_context>
chip_gen: v5e
topology: v5e:2x2
jax: 0.10.0
libtpu: 0.0.40
codegen_flags: <defaults>
</compile_context>

<pallas_src>
import functools

import jax
import jax.numpy as jnp
from jax.experimental import pallas as pl
from jax.experimental.pallas import tpu as pltpu


_TAPS = tuple((dy, dx) for dy in range(3) for dx in range(3))  # t = dy*3 + dx


# ----------------------------- Pallas kernel -------------------------------

def _make_gelayer1_kernel(H, W, Cin, Cexp, Cout, ratio):
    P = H * W

    def shifted_masked(arr, mask_ref, t, dy, dx):
        """arr[:, p + off] (flat H*W shift) with out-of-image taps zeroed."""
        off = (dy - 1) * W + (dx - 1)
        s = pltpu.roll(arr, shift=(-off) % P, axis=1) if off != 0 else arr
        if dy == 1 and dx == 1:          # center tap: mask is all-ones
            return s
        return s * mask_ref[t]           # mask_ref[t]: (1, P)

    def kernel(x_ref,                    # (Cin, P)      f32  raw NCHW image (flat)
               mask_ref,                 # (9, 1, P)     f32  per-tap validity
               w1_ref,                   # (Cin, 9*Cin)  bf16 conv1 taps, BN1 scale folded
               wdw_ref,                  # (9, Cexp, 1)  f32  depthwise taps, BNdw scale folded
               w2_ref,                   # (Cout, Cexp)  bf16 conv2, BN2 scale folded
               b1_ref,                   # (Cin, 1)      f32
               bd_ref,                   # (Cexp, 1)     f32
               b2_ref,                   # (Cout, 1)     f32
               o_ref):                   # (Cout, P)     f32  lane-dense output
        xf = x_ref[...]                                              # (Cin, P) f32

        # ---- conv1: 3x3, Cin -> Cin, + BN + ReLU (one K=9*Cin MXU matmul) ----
        pieces = [shifted_masked(xf, mask_ref, t, dy, dx)
                  for t, (dy, dx) in enumerate(_TAPS)]               # 9 x (Cin, P)
        xcat = jnp.concatenate(pieces, axis=0).astype(jnp.bfloat16)  # (9*Cin, P)
        y1 = jnp.dot(w1_ref[...], xcat,
                     preferred_element_type=jnp.float32)             # (Cin, P)
        y1 = jnp.maximum(y1 + b1_ref[...], 0.0)

        # ---- expand channels Cin -> Cin*ratio (stride-0 sublane broadcast) ----
        # expanded channel e = c*ratio + r reads input channel c  (== e // ratio)
        y1e = jnp.concatenate(
            [jnp.broadcast_to(y1[c:c + 1, :], (ratio, P)) for c in range(Cin)],
            axis=0)                                                   # (Cexp, P) f32

        # ---- dwconv: true depthwise 3x3 (VPU MACs in f32) + BN + ReLU ----
        acc = None
        for t, (dy, dx) in enumerate(_TAPS):
            term = wdw_ref[t] * shifted_masked(y1e, mask_ref, t, dy, dx)
            acc = term if acc is None else acc + term                 # (Cexp, P)
        y2 = jnp.maximum(acc + bd_ref[...], 0.0)

        # ---- conv2: 1x1, Cexp -> Cout, + BN + residual + ReLU ----
        y3 = jnp.dot(w2_ref[...], y2.astype(jnp.bfloat16),
                     preferred_element_type=jnp.float32)              # (Cout, P)
        o_ref[...] = jnp.maximum(y3 + b2_ref[...] + xf, 0.0).astype(o_ref.dtype)

    return kernel


# ------------------------------- JAX glue ----------------------------------

def _bn_fold(gamma, beta, mean, var, eps=1e-5):
    scale = gamma / jnp.sqrt(var + eps)
    bias = beta - mean * scale
    return scale, bias


def init_gelayer1_params(key, in_dim, out_dim, ratio=6):
    """Deterministic synthetic parameters matching GELayer1.__init__ shapes."""
    exp_dim = in_dim * ratio
    k1, k2, k3 = jax.random.split(key, 3)
    params = {
        "w_conv1": 0.1 * jax.random.normal(k1, (in_dim, in_dim, 3, 3), jnp.float32),
        "w_dw":    0.1 * jax.random.normal(k2, (exp_dim, 1, 3, 3), jnp.float32),
        "w_conv2": 0.1 * jax.random.normal(k3, (out_dim, exp_dim, 1, 1), jnp.float32),
    }
    for name, c in (("bn1", in_dim), ("bn_dw", exp_dim), ("bn2", out_dim)):
        params[name] = {
            "gamma": jnp.ones((c,), jnp.float32),
            "beta": jnp.zeros((c,), jnp.float32),
            "mean": jnp.zeros((c,), jnp.float32),
            "var": jnp.ones((c,), jnp.float32),
        }
    return params


@functools.partial(jax.jit, static_argnames=("in_dim", "out_dim", "ratio"))
def gelayer1_forward(x_nchw, params, *, in_dim, out_dim, ratio=6):
    """GELayer1 forward. Input/output NCHW float32 (PyTorch convention)."""
    assert in_dim == out_dim, "GELayer1 residual add requires in_dim == out_dim"
    exp_dim = in_dim * ratio
    n, _, h, w = x_nchw.shape
    p = h * w

    # --- fold BN into conv weights (tiny host-side math, done by XLA) ---
    s1, b1 = _bn_fold(**params["bn1"])
    sd, bd = _bn_fold(**params["bn_dw"])
    s2, b2 = _bn_fold(**params["bn2"])

    # conv1 (Cout, Cin, 3, 3) -> (Cin, 9*Cin) with column = t*Cin + ci, scale folded.
    w1cat = (params["w_conv1"] * s1[:, None, None, None])
    w1cat = w1cat.transpose(0, 2, 3, 1).reshape(in_dim, 9 * in_dim).astype(jnp.bfloat16)
    # depthwise (Cexp, 1, 3, 3) -> (9, Cexp, 1), scale folded, f32.
    wdw = (params["w_dw"][:, 0] * sd[:, None, None])
    wdw = wdw.transpose(1, 2, 0).reshape(9, exp_dim, 1).astype(jnp.float32)
    # conv2 1x1 (Cout, Cexp, 1, 1) -> (Cout, Cexp), scale folded, bf16.
    w2 = (params["w_conv2"][:, :, 0, 0] * s2[:, None]).astype(jnp.bfloat16)

    b1 = b1.reshape(in_dim, 1).astype(jnp.float32)
    bd = bd.reshape(exp_dim, 1).astype(jnp.float32)
    b2 = b2.reshape(out_dim, 1).astype(jnp.float32)

    # Per-tap validity masks (9, 1, H*W): zero where the 3x3 tap would read
    # outside the image (replaces the zero-padded HBM/VMEM buffer).
    yy = jnp.arange(h)[:, None]
    xx = jnp.arange(w)[None, :]
    mask_list = []
    for dy in range(3):
        for dx in range(3):
            m = ((yy + dy - 1 >= 0) & (yy + dy - 1 < h) &
                 (xx + dx - 1 >= 0) & (xx + dx - 1 < w))
            mask_list.append(m.reshape(1, p))
    masks = jnp.stack(mask_list, axis=0).astype(jnp.float32)          # (9, 1, P)

    # Free (no-copy) reshape: NCHW -> (N, C, H*W).  No transpose, no pad.
    x_flat = x_nchw.reshape(n, in_dim, p).astype(jnp.float32)

    kernel = _make_gelayer1_kernel(h, w, in_dim, exp_dim, out_dim, ratio)

    out_flat = pl.pallas_call(
        kernel,
        out_shape=jax.ShapeDtypeStruct((n, out_dim, p), jnp.float32),
        grid=(n,),
        in_specs=[
            pl.BlockSpec((None, in_dim, p), lambda i: (i, 0, 0)),
            pl.BlockSpec((9, 1, p), lambda i: (0, 0, 0)),
            pl.BlockSpec((in_dim, 9 * in_dim), lambda i: (0, 0)),
            pl.BlockSpec((9, exp_dim, 1), lambda i: (0, 0, 0)),
            pl.BlockSpec((out_dim, exp_dim), lambda i: (0, 0)),
            pl.BlockSpec((in_dim, 1), lambda i: (0, 0)),
            pl.BlockSpec((exp_dim, 1), lambda i: (0, 0)),
            pl.BlockSpec((out_dim, 1), lambda i: (0, 0)),
        ],
        out_specs=pl.BlockSpec((None, out_dim, p), lambda i: (i, 0, 0)),
        compiler_params=pltpu.CompilerParams(
            dimension_semantics=("parallel",),
        ),
    )(x_flat, masks, w1cat, wdw, w2, b1, bd, b2)

    # Free (no-copy) reshape back to NCHW.
    return out_flat.reshape(n, out_dim, h, w)


# ------------------------- pure-JAX reference (f32) -------------------------

def _gelayer1_reference(x, params, in_dim, out_dim, ratio):
    def conv(x, w, groups, pad):
        return jax.lax.conv_general_dilated(
            x, w, window_strides=(1, 1), padding=[(pad, pad), (pad, pad)],
            dimension_numbers=("NCHW", "OIHW", "NCHW"),
            feature_group_count=groups)

    def bn(x, p, eps=1e-5):
        s = p["gamma"] / jnp.sqrt(p["var"] + eps)
        b = p["beta"] - p["mean"] * s
        return x * s[None, :, None, None] + b[None, :, None, None]

    y = jax.nn.relu(bn(conv(x, params["w_conv1"], 1, 1), params["bn1"]))
    y = jax.nn.relu(bn(conv(y, params["w_dw"], in_dim, 1), params["bn_dw"]))
    y = bn(conv(y, params["w_conv2"], 1, 0), params["bn2"])
    return jax.nn.relu(x + y)


# --------------------------------- main -------------------------------------

if __name__ == "__main__":
    N, C, H, W = 2, 4, 16, 16     # small shapes; in_dim == out_dim == 4
    RATIO = 6

    key = jax.random.PRNGKey(0)
    kx, kp = jax.random.split(key)
    x = jax.random.normal(kx, (N, C, H, W), jnp.float32)
    params = init_gelayer1_params(kp, C, C, RATIO)

    out = gelayer1_forward(x, params, in_dim=C, out_dim=C, ratio=RATIO)
    out = jax.block_until_ready(out)

    assert out.shape == (N, C, H, W), out.shape
    assert out.dtype == jnp.float32
    assert bool(jnp.all(jnp.isfinite(out)))
    assert bool(jnp.all(out >= 0.0))   # final ReLU

    ref = _gelayer1_reference(x, params, C, C, RATIO)
    assert bool(jnp.allclose(out, ref, atol=2e-2, rtol=2e-2)), \
        float(jnp.max(jnp.abs(out - ref)))

    print("KERNEL_OK")
</pallas_src>

<mosaic_0001>
module attributes {stable_mosaic.version = 11 : i64} {
  func.func @kernel(%arg0: i32, %arg1: memref<1x4x256xf32, #tpu.memory_space<vmem>>, %arg2: memref<9x1x256xf32, #tpu.memory_space<vmem>>, %arg3: memref<4x36xbf16, #tpu.memory_space<vmem>>, %arg4: memref<9x24x1xf32, #tpu.memory_space<vmem>>, %arg5: memref<4x24xbf16, #tpu.memory_space<vmem>>, %arg6: memref<4x1xf32, #tpu.memory_space<vmem>>, %arg7: memref<24x1xf32, #tpu.memory_space<vmem>>, %arg8: memref<4x1xf32, #tpu.memory_space<vmem>>, %arg9: memref<1x4x256xf32, #tpu.memory_space<vmem>>) attributes {dimension_semantics = [#tpu.dimension_semantics<parallel>], iteration_bounds = array<i64: 2>, scalar_prefetch = 0 : i64, scratch_operands = 0 : i64, tpu.core_type = #tpu.core_type<tc>, window_params = [{transform_indices = @transform_0, window_bounds = array<i64: 1, 4, 256>}, {pipeline_mode = #tpu.pipeline_mode<synchronous>, transform_indices = @transform_1, window_bounds = array<i64: 9, 1, 256>}, {pipeline_mode = #tpu.pipeline_mode<synchronous>, transform_indices = @transform_2, window_bounds = array<i64: 4, 36>}, {pipeline_mode = #tpu.pipeline_mode<synchronous>, transform_indices = @transform_3, window_bounds = array<i64: 9, 24, 1>}, {pipeline_mode = #tpu.pipeline_mode<synchronous>, transform_indices = @transform_4, window_bounds = array<i64: 4, 24>}, {pipeline_mode = #tpu.pipeline_mode<synchronous>, transform_indices = @transform_5, window_bounds = array<i64: 4, 1>}, {pipeline_mode = #tpu.pipeline_mode<synchronous>, transform_indices = @transform_6, window_bounds = array<i64: 24, 1>}, {pipeline_mode = #tpu.pipeline_mode<synchronous>, transform_indices = @transform_7, window_bounds = array<i64: 4, 1>}, {transform_indices = @transform_8, window_bounds = array<i64: 1, 4, 256>}]} {
    %c0 = arith.constant 0 : index
    %c0_0 = arith.constant 0 : index
    %c0_1 = arith.constant 0 : index
    %0 = vector.load %arg1[%c0, %c0_0, %c0_1] : memref<1x4x256xf32, #tpu.memory_space<vmem>>, vector<1x4x256xf32>
    %1 = vector.shape_cast %0 : vector<1x4x256xf32> to vector<4x256xf32>
    %c17_i32 = arith.constant 17 : i32
    %2 = tpu.dynamic_rotate %1 by %c17_i32 dim 1 : vector<4x256xf32>, i32 -> vector<4x256xf32>
    %c0_2 = arith.constant 0 : index
    %c0_3 = arith.constant 0 : index
    %c0_4 = arith.constant 0 : index
    %3 = vector.load %arg2[%c0_2, %c0_3, %c0_4] : memref<9x1x256xf32, #tpu.memory_space<vmem>>, vector<1x1x256xf32>
    %4 = vector.shape_cast %3 : vector<1x1x256xf32> to vector<1x256xf32>
    %5 = vector.broadcast %4 : vector<1x256xf32> to vector<4x256xf32>
    %6 = arith.mulf %2, %5 : vector<4x256xf32>
    %c16_i32 = arith.constant 16 : i32
    %7 = tpu.dynamic_rotate %1 by %c16_i32 dim 1 : vector<4x256xf32>, i32 -> vector<4x256xf32>
    %c1 = arith.constant 1 : index
    %c0_5 = arith.constant 0 : index
    %c0_6 = arith.constant 0 : index
    %8 = vector.load %arg2[%c1, %c0_5, %c0_6] : memref<9x1x256xf32, #tpu.memory_space<vmem>>, vector<1x1x256xf32>
    %9 = vector.shape_cast %8 : vector<1x1x256xf32> to vector<1x256xf32>
    %10 = vector.broadcast %9 : vector<1x256xf32> to vector<4x256xf32>
    %11 = arith.mulf %7, %10 : vector<4x256xf32>
    %c15_i32 = arith.constant 15 : i32
    %12 = tpu.dynamic_rotate %1 by %c15_i32 dim 1 : vector<4x256xf32>, i32 -> vector<4x256xf32>
    %c2 = arith.constant 2 : index
    %c0_7 = arith.constant 0 : index
    %c0_8 = arith.constant 0 : index
    %13 = vector.load %arg2[%c2, %c0_7, %c0_8] : memref<9x1x256xf32, #tpu.memory_space<vmem>>, vector<1x1x256xf32>
    %14 = vector.shape_cast %13 : vector<1x1x256xf32> to vector<1x256xf32>
    %15 = vector.broadcast %14 : vector<1x256xf32> to vector<4x256xf32>
    %16 = arith.mulf %12, %15 : vector<4x256xf32>
    %c1_i32 = arith.constant 1 : i32
    %17 = tpu.dynamic_rotate %1 by %c1_i32 dim 1 : vector<4x256xf32>, i32 -> vector<4x256xf32>
    %c3 = arith.constant 3 : index
    %c0_9 = arith.constant 0 : index
    %c0_10 = arith.constant 0 : index
    %18 = vector.load %arg2[%c3, %c0_9, %c0_10] : memref<9x1x256xf32, #tpu.memory_space<vmem>>, vector<1x1x256xf32>
    %19 = vector.shape_cast %18 : vector<1x1x256xf32> to vector<1x256xf32>
    %20 = vector.broadcast %19 : vector<1x256xf32> to vector<4x256xf32>
    %21 = arith.mulf %17, %20 : vector<4x256xf32>
    %c255_i32 = arith.constant 255 : i32
    %22 = tpu.dynamic_rotate %1 by %c255_i32 dim 1 : vector<4x256xf32>, i32 -> vector<4x256xf32>
    %c5 = arith.constant 5 : index
    %c0_11 = arith.constant 0 : index
    %c0_12 = arith.constant 0 : index
    %23 = vector.load %arg2[%c5, %c0_11, %c0_12] : memref<9x1x256xf32, #tpu.memory_space<vmem>>, vector<1x1x256xf32>
    %24 = vector.shape_cast %23 : vector<1x1x256xf32> to vector<1x256xf32>
    %25 = vector.broadcast %24 : vector<1x256xf32> to vector<4x256xf32>
    %26 = arith.mulf %22, %25 : vector<4x256xf32>
    %c241_i32 = arith.constant 241 : i32
    %27 = tpu.dynamic_rotate %1 by %c241_i32 dim 1 : vector<4x256xf32>, i32 -> vector<4x256xf32>
    %c6 = arith.constant 6 : index
    %c0_13 = arith.constant 0 : index
    %c0_14 = arith.constant 0 : index
    %28 = vector.load %arg2[%c6, %c0_13, %c0_14] : memref<9x1x256xf32, #tpu.memory_space<vmem>>, vector<1x1x256xf32>
    %29 = vector.shape_cast %28 : vector<1x1x256xf32> to vector<1x256xf32>
    %30 = vector.broadcast %29 : vector<1x256xf32> to vector<4x256xf32>
    %31 = arith.mulf %27, %30 : vector<4x256xf32>
    %c240_i32 = arith.constant 240 : i32
    %32 = tpu.dynamic_rotate %1 by %c240_i32 dim 1 : vector<4x256xf32>, i32 -> vector<4x256xf32>
    %c7 = arith.constant 7 : index
    %c0_15 = arith.constant 0 : index
    %c0_16 = arith.constant 0 : index
    %33 = vector.load %arg2[%c7, %c0_15, %c0_16] : memref<9x1x256xf32, #tpu.memory_space<vmem>>, vector<1x1x256xf32>
    %34 = vector.shape_cast %33 : vector<1x1x256xf32> to vector<1x256xf32>
    %35 = vector.broadcast %34 : vector<1x256xf32> to vector<4x256xf32>
    %36 = arith.mulf %32, %35 : vector<4x256xf32>
    %c239_i32 = arith.constant 239 : i32
    %37 = tpu.dynamic_rotate %1 by %c239_i32 dim 1 : vector<4x256xf32>, i32 -> vector<4x256xf32>
    %c8 = arith.constant 8 : index
    %c0_17 = arith.constant 0 : index
    %c0_18 = arith.constant 0 : index
    %38 = vector.load %arg2[%c8, %c0_17, %c0_18] : memref<9x1x256xf32, #tpu.memory_space<vmem>>, vector<1x1x256xf32>
    %39 = vector.shape_cast %38 : vector<1x1x256xf32> to vector<1x256xf32>
    %40 = vector.broadcast %39 : vector<1x256xf32> to vector<4x256xf32>
    %41 = arith.mulf %37, %40 : vector<4x256xf32>
    %42 = tpu.concatenate %6, %11, %16, %21, %1, %26, %31, %36, %41 in 0 : vector<4x256xf32>, vector<4x256xf32>, vector<4x256xf32>, vector<4x256xf32>, vector<4x256xf32>, vector<4x256xf32>, vector<4x256xf32>, vector<4x256xf32>, vector<4x256xf32> -> vector<36x256xf32>
    %43 = arith.truncf %42 : vector<36x256xf32> to vector<36x256xbf16>
    %c0_19 = arith.constant 0 : index
    %c0_20 = arith.constant 0 : index
    %44 = vector.load %arg3[%c0_19, %c0_20] : memref<4x36xbf16, #tpu.memory_space<vmem>>, vector<4x36xbf16>
    %cst = arith.constant dense<0.000000e+00> : vector<4x256xf32>
    %45 = tpu.matmul %44, %43, %cst {dimension_numbers = #tpu.dot_dimension_numbers<[1], [0], [0], [1], [0, 0, 1, 1], [], []>} : vector<4x36xbf16>, vector<36x256xbf16>, vector<4x256xf32> -> vector<4x256xf32>
    %c0_21 = arith.constant 0 : index
    %c0_22 = arith.constant 0 : index
    %46 = vector.load %arg6[%c0_21, %c0_22] : memref<4x1xf32, #tpu.memory_space<vmem>>, vector<4x1xf32>
    %47 = vector.broadcast %46 : vector<4x1xf32> to vector<4x256xf32>
    %48 = arith.addf %45, %47 : vector<4x256xf32>
    %cst_23 = arith.constant 0.000000e+00 : f32
    %49 = vector.broadcast %cst_23 : f32 to vector<4x256xf32>
    %50 = arith.maximumf %48, %49 : vector<4x256xf32>
    %51 = vector.extract_strided_slice %50 {offsets = [0, 0], sizes = [1, 256], strides = [1, 1]} : vector<4x256xf32> to vector<1x256xf32>
    %52 = vector.shape_cast %51 : vector<1x256xf32> to vector<1x256xf32>
    %53 = vector.broadcast %52 : vector<1x256xf32> to vector<6x256xf32>
    %54 = vector.extract_strided_slice %50 {offsets = [1, 0], sizes = [1, 256], strides = [1, 1]} : vector<4x256xf32> to vector<1x256xf32>
    %55 = vector.shape_cast %54 : vector<1x256xf32> to vector<1x256xf32>
    %56 = vector.broadcast %55 : vector<1x256xf32> to vector<6x256xf32>
    %57 = vector.extract_strided_slice %50 {offsets = [2, 0], sizes = [1, 256], strides = [1, 1]} : vector<4x256xf32> to vector<1x256xf32>
    %58 = vector.shape_cast %57 : vector<1x256xf32> to vector<1x256xf32>
    %59 = vector.broadcast %58 : vector<1x256xf32> to vector<6x256xf32>
    %60 = vector.extract_strided_slice %50 {offsets = [3, 0], sizes = [1, 256], strides = [1, 1]} : vector<4x256xf32> to vector<1x256xf32>
    %61 = vector.shape_cast %60 : vector<1x256xf32> to vector<1x256xf32>
    %62 = vector.broadcast %61 : vector<1x256xf32> to vector<6x256xf32>
    %63 = tpu.concatenate %53, %56, %59, %62 in 0 : vector<6x256xf32>, vector<6x256xf32>, vector<6x256xf32>, vector<6x256xf32> -> vector<24x256xf32>
    %c0_24 = arith.constant 0 : index
    %c0_25 = arith.constant 0 : index
    %c0_26 = arith.constant 0 : index
    %64 = vector.load %arg4[%c0_24, %c0_25, %c0_26] : memref<9x24x1xf32, #tpu.memory_space<vmem>>, vector<1x24x1xf32>
    %65 = vector.shape_cast %64 : vector<1x24x1xf32> to vector<24x1xf32>
    %c17_i32_27 = arith.constant 17 : i32
    %66 = tpu.dynamic_rotate %63 by %c17_i32_27 dim 1 : vector<24x256xf32>, i32 -> vector<24x256xf32>
    %c0_28 = arith.constant 0 : index
    %c0_29 = arith.constant 0 : index
    %c0_30 = arith.constant 0 : index
    %67 = vector.load %arg2[%c0_28, %c0_29, %c0_30] : memref<9x1x256xf32, #tpu.memory_space<vmem>>, vector<1x1x256xf32>
    %68 = vector.shape_cast %67 : vector<1x1x256xf32> to vector<1x256xf32>
    %69 = vector.broadcast %68 : vector<1x256xf32> to vector<24x256xf32>
    %70 = arith.mulf %66, %69 : vector<24x256xf32>
    %71 = vector.broadcast %65 : vector<24x1xf32> to vector<24x256xf32>
    %72 = arith.mulf %71, %70 : vector<24x256xf32>
    %c1_31 = arith.constant 1 : index
    %c0_32 = arith.constant 0 : index
    %c0_33 = arith.constant 0 : index
    %73 = vector.load %arg4[%c1_31, %c0_32, %c0_33] : memref<9x24x1xf32, #tpu.memory_space<vmem>>, vector<1x24x1xf32>
    %74 = vector.shape_cast %73 : vector<1x24x1xf32> to vector<24x1xf32>
    %c16_i32_34 = arith.constant 16 : i32
    %75 = tpu.dynamic_rotate %63 by %c16_i32_34 dim 1 : vector<24x256xf32>, i32 -> vector<24x256xf32>
    %c1_35 = arith.constant 1 : index
    %c0_36 = arith.constant 0 : index
    %c0_37 = arith.constant 0 : index
    %76 = vector.load %arg2[%c1_35, %c0_36, %c0_37] : memref<9x1x256xf32, #tpu.memory_space<vmem>>, vector<1x1x256xf32>
    %77 = vector.shape_cast %76 : vector<1x1x256xf32> to vector<1x256xf32>
    %78 = vector.broadcast %77 : vector<1x256xf32> to vector<24x256xf32>
    %79 = arith.mulf %75, %78 : vector<24x256xf32>
    %80 = vector.broadcast %74 : vector<24x1xf32> to vector<24x256xf32>
    %81 = arith.mulf %80, %79 : vector<24x256xf32>
    %82 = arith.addf %72, %81 : vector<24x256xf32>
    %c2_38 = arith.constant 2 : index
    %c0_39 = arith.constant 0 : index
    %c0_40 = arith.constant 0 : index
    %83 = vector.load %arg4[%c2_38, %c0_39, %c0_40] : memref<9x24x1xf32, #tpu.memory_space<vmem>>, vector<1x24x1xf32>
    %84 = vector.shape_cast %83 : vector<1x24x1xf32> to vector<24x1xf32>
    %c15_i32_41 = arith.constant 15 : i32
    %85 = tpu.dynamic_rotate %63 by %c15_i32_41 dim 1 : vector<24x256xf32>, i32 -> vector<24x256xf32>
    %c2_42 = arith.constant 2 : index
    %c0_43 = arith.constant 0 : index
    %c0_44 = arith.constant 0 : index
    %86 = vector.load %arg2[%c2_42, %c0_43, %c0_44] : memref<9x1x256xf32, #tpu.memory_space<vmem>>, vector<1x1x256xf32>
    %87 = vector.shape_cast %86 : vector<1x1x256xf32> to vector<1x256xf32>
    %88 = vector.broadcast %87 : vector<1x256xf32> to vector<24x256xf32>
    %89 = arith.mulf %85, %88 : vector<24x256xf32>
    %90 = vector.broadcast %84 : vector<24x1xf32> to vector<24x256xf32>
    %91 = arith.mulf %90, %89 : vector<24x256xf32>
    %92 = arith.addf %82, %91 : vector<24x256xf32>
    %c3_45 = arith.constant 3 : index
    %c0_46 = arith.constant 0 : index
    %c0_47 = arith.constant 0 : index
    %93 = vector.load %arg4[%c3_45, %c0_46, %c0_47] : memref<9x24x1xf32, #tpu.memory_space<vmem>>, vector<1x24x1xf32>
    %94 = vector.shape_cast %93 : vector<1x24x1xf32> to vector<24x1xf32>
    %c1_i32_48 = arith.constant 1 : i32
    %95 = tpu.dynamic_rotate %63 by %c1_i32_48 dim 1 : vector<24x256xf32>, i32 -> vector<24x256xf32>
    %c3_49 = arith.constant 3 : index
    %c0_50 = arith.constant 0 : index
    %c0_51 = arith.constant 0 : index
    %96 = vector.load %arg2[%c3_49, %c0_50, %c0_51] : memref<9x1x256xf32, #tpu.memory_space<vmem>>, vector<1x1x256xf32>
    %97 = vector.shape_cast %96 : vector<1x1x256xf32> to vector<1x256xf32>
    %98 = vector.broadcast %97 : vector<1x256xf32> to vector<24x256xf32>
    %99 = arith.mulf %95, %98 : vector<24x256xf32>
    %100 = vector.broadcast %94 : vector<24x1xf32> to vector<24x256xf32>
    %101 = arith.mulf %100, %99 : vector<24x256xf32>
    %102 = arith.addf %92, %101 : vector<24x256xf32>
    %c4 = arith.constant 4 : index
    %c0_52 = arith.constant 0 : index
    %c0_53 = arith.constant 0 : index
    %103 = vector.load %arg4[%c4, %c0_52, %c0_53] : memref<9x24x1xf32, #tpu.memory_space<vmem>>, vector<1x24x1xf32>
    %104 = vector.shape_cast %103 : vector<1x24x1xf32> to vector<24x1xf32>
    %105 = vector.broadcast %104 : vector<24x1xf32> to vector<24x256xf32>
    %106 = arith.mulf %105, %63 : vector<24x256xf32>
    %107 = arith.addf %102, %106 : vector<24x256xf32>
    %c5_54 = arith.constant 5 : index
    %c0_55 = arith.constant 0 : index
    %c0_56 = arith.constant 0 : index
    %108 = vector.load %arg4[%c5_54, %c0_55, %c0_56] : memref<9x24x1xf32, #tpu.memory_space<vmem>>, vector<1x24x1xf32>
    %109 = vector.shape_cast %108 : vector<1x24x1xf32> to vector<24x1xf32>
    %c255_i32_57 = arith.constant 255 : i32
    %110 = tpu.dynamic_rotate %63 by %c255_i32_57 dim 1 : vector<24x256xf32>, i32 -> vector<24x256xf32>
    %c5_58 = arith.constant 5 : index
    %c0_59 = arith.constant 0 : index
    %c0_60 = arith.constant 0 : index
    %111 = vector.load %arg2[%c5_58, %c0_59, %c0_60] : memref<9x1x256xf32, #tpu.memory_space<vmem>>, vector<1x1x256xf32>
    %112 = vector.shape_cast %111 : vector<1x1x256xf32> to vector<1x256xf32>
    %113 = vector.broadcast %112 : vector<1x256xf32> to vector<24x256xf32>
    %114 = arith.mulf %110, %113 : vector<24x256xf32>
    %115 = vector.broadcast %109 : vector<24x1xf32> to vector<24x256xf32>
    %116 = arith.mulf %115, %114 : vector<24x256xf32>
    %117 = arith.addf %107, %116 : vector<24x256xf32>
    %c6_61 = arith.constant 6 : index
    %c0_62 = arith.constant 0 : index
    %c0_63 = arith.constant 0 : index
    %118 = vector.load %arg4[%c6_61, %c0_62, %c0_63] : memref<9x24x1xf32, #tpu.memory_space<vmem>>, vector<1x24x1xf32>
    %119 = vector.shape_cast %118 : vector<1x24x1xf32> to vector<24x1xf32>
    %c241_i32_64 = arith.constant 241 : i32
    %120 = tpu.dynamic_rotate %63 by %c241_i32_64 dim 1 : vector<24x256xf32>, i32 -> vector<24x256xf32>
    %c6_65 = arith.constant 6 : index
    %c0_66 = arith.constant 0 : index
    %c0_67 = arith.constant 0 : index
    %121 = vector.load %arg2[%c6_65, %c0_66, %c0_67] : memref<9x1x256xf32, #tpu.memory_space<vmem>>, vector<1x1x256xf32>
    %122 = vector.shape_cast %121 : vector<1x1x256xf32> to vector<1x256xf32>
    %123 = vector.broadcast %122 : vector<1x256xf32> to vector<24x256xf32>
    %124 = arith.mulf %120, %123 : vector<24x256xf32>
    %125 = vector.broadcast %119 : vector<24x1xf32> to vector<24x256xf32>
    %126 = arith.mulf %125, %124 : vector<24x256xf32>
    %127 = arith.addf %117, %126 : vector<24x256xf32>
    %c7_68 = arith.constant 7 : index
    %c0_69 = arith.constant 0 : index
    %c0_70 = arith.constant 0 : index
    %128 = vector.load %arg4[%c7_68, %c0_69, %c0_70] : memref<9x24x1xf32, #tpu.memory_space<vmem>>, vector<1x24x1xf32>
    %129 = vector.shape_cast %128 : vector<1x24x1xf32> to vector<24x1xf32>
    %c240_i32_71 = arith.constant 240 : i32
    %130 = tpu.dynamic_rotate %63 by %c240_i32_71 dim 1 : vector<24x256xf32>, i32 -> vector<24x256xf32>
    %c7_72 = arith.constant 7 : index
    %c0_73 = arith.constant 0 : index
    %c0_74 = arith.constant 0 : index
    %131 = vector.load %arg2[%c7_72, %c0_73, %c0_74] : memref<9x1x256xf32, #tpu.memory_space<vmem>>, vector<1x1x256xf32>
    %132 = vector.shape_cast %131 : vector<1x1x256xf32> to vector<1x256xf32>
    %133 = vector.broadcast %132 : vector<1x256xf32> to vector<24x256xf32>
    %134 = arith.mulf %130, %133 : vector<24x256xf32>
    %135 = vector.broadcast %129 : vector<24x1xf32> to vector<24x256xf32>
    %136 = arith.mulf %135, %134 : vector<24x256xf32>
    %137 = arith.addf %127, %136 : vector<24x256xf32>
    %c8_75 = arith.constant 8 : index
    %c0_76 = arith.constant 0 : index
    %c0_77 = arith.constant 0 : index
    %138 = vector.load %arg4[%c8_75, %c0_76, %c0_77] : memref<9x24x1xf32, #tpu.memory_space<vmem>>, vector<1x24x1xf32>
    %139 = vector.shape_cast %138 : vector<1x24x1xf32> to vector<24x1xf32>
    %c239_i32_78 = arith.constant 239 : i32
    %140 = tpu.dynamic_rotate %63 by %c239_i32_78 dim 1 : vector<24x256xf32>, i32 -> vector<24x256xf32>
    %c8_79 = arith.constant 8 : index
    %c0_80 = arith.constant 0 : index
    %c0_81 = arith.constant 0 : index
    %141 = vector.load %arg2[%c8_79, %c0_80, %c0_81] : memref<9x1x256xf32, #tpu.memory_space<vmem>>, vector<1x1x256xf32>
    %142 = vector.shape_cast %141 : vector<1x1x256xf32> to vector<1x256xf32>
    %143 = vector.broadcast %142 : vector<1x256xf32> to vector<24x256xf32>
    %144 = arith.mulf %140, %143 : vector<24x256xf32>
    %145 = vector.broadcast %139 : vector<24x1xf32> to vector<24x256xf32>
    %146 = arith.mulf %145, %144 : vector<24x256xf32>
    %147 = arith.addf %137, %146 : vector<24x256xf32>
    %c0_82 = arith.constant 0 : index
    %c0_83 = arith.constant 0 : index
    %148 = vector.load %arg7[%c0_82, %c0_83] : memref<24x1xf32, #tpu.memory_space<vmem>>, vector<24x1xf32>
    %149 = vector.broadcast %148 : vector<24x1xf32> to vector<24x256xf32>
    %150 = arith.addf %147, %149 : vector<24x256xf32>
    %cst_84 = arith.constant 0.000000e+00 : f32
    %151 = vector.broadcast %cst_84 : f32 to vector<24x256xf32>
    %152 = arith.maximumf %150, %151 : vector<24x256xf32>
    %c0_85 = arith.constant 0 : index
    %c0_86 = arith.constant 0 : index
    %153 = vector.load %arg5[%c0_85, %c0_86] : memref<4x24xbf16, #tpu.memory_space<vmem>>, vector<4x24xbf16>
    %154 = arith.truncf %152 : vector<24x256xf32> to vector<24x256xbf16>
    %cst_87 = arith.constant dense<0.000000e+00> : vector<4x256xf32>
    %155 = tpu.matmul %153, %154, %cst_87 {dimension_numbers = #tpu.dot_dimension_numbers<[1], [0], [0], [1], [0, 0, 1, 1], [], []>} : vector<4x24xbf16>, vector<24x256xbf16>, vector<4x256xf32> -> vector<4x256xf32>
    %c0_88 = arith.constant 0 : index
    %c0_89 = arith.constant 0 : index
    %156 = vector.load %arg8[%c0_88, %c0_89] : memref<4x1xf32, #tpu.memory_space<vmem>>, vector<4x1xf32>
    %157 = vector.broadcast %156 : vector<4x1xf32> to vector<4x256xf32>
    %158 = arith.addf %155, %157 : vector<4x256xf32>
    %159 = arith.addf %158, %1 : vector<4x256xf32>
    %cst_90 = arith.constant 0.000000e+00 : f32
    %160 = vector.broadcast %cst_90 : f32 to vector<4x256xf32>
    %161 = arith.maximumf %159, %160 : vector<4x256xf32>
    %c0_91 = arith.constant 0 : index
    %c0_92 = arith.constant 0 : index
    %c0_93 = arith.constant 0 : index
    %162 = vector.load %arg9[%c0_91, %c0_92, %c0_93] : memref<1x4x256xf32, #tpu.memory_space<vmem>>, vector<1x4x256xf32>
    %163 = vector.shape_cast %162 : vector<1x4x256xf32> to vector<4x256xf32>
    %164 = vector.shape_cast %161 : vector<4x256xf32> to vector<1x4x256xf32>
    tpu.vector_store %arg9[%c0_91, %c0_92, %c0_93], %164 {strides = array<i32>} : memref<1x4x256xf32, #tpu.memory_space<vmem>>, vector<1x4x256xf32>,
    return
  }
  func.func @transform_0(%arg0: i32) -> (i32, i32, i32) {
    %c0_i32 = arith.constant 0 : i32
    %c0_i32_0 = arith.constant 0 : i32
    %c0_i32_1 = arith.constant 0 : i32
    return %arg0, %c0_i32, %c0_i32_0 : i32, i32, i32
  }
  func.func @transform_1(%arg0: i32) -> (i32, i32, i32) {
    %c0_i32 = arith.constant 0 : i32
    %c0_i32_0 = arith.constant 0 : i32
    %c0_i32_1 = arith.constant 0 : i32
    %c0_i32_2 = arith.constant 0 : i32
    return %c0_i32, %c0_i32_0, %c0_i32_1 : i32, i32, i32
  }
  func.func @transform_2(%arg0: i32) -> (i32, i32) {
    %c0_i32 = arith.constant 0 : i32
    %c0_i32_0 = arith.constant 0 : i32
    %c0_i32_1 = arith.constant 0 : i32
    return %c0_i32, %c0_i32_0 : i32, i32
  }
  func.func @transform_3(%arg0: i32) -> (i32, i32, i32) {
    %c0_i32 = arith.constant 0 : i32
    %c0_i32_0 = arith.constant 0 : i32
    %c0_i32_1 = arith.constant 0 : i32
    %c0_i32_2 = arith.constant 0 : i32
    return %c0_i32, %c0_i32_0, %c0_i32_1 : i32, i32, i32
  }
  func.func @transform_4(%arg0: i32) -> (i32, i32) {
    %c0_i32 = arith.constant 0 : i32
    %c0_i32_0 = arith.constant 0 : i32
    %c0_i32_1 = arith.constant 0 : i32
    return %c0_i32, %c0_i32_0 : i32, i32
  }
  func.func @transform_5(%arg0: i32) -> (i32, i32) {
    %c0_i32 = arith.constant 0 : i32
    %c0_i32_0 = arith.constant 0 : i32
    %c0_i32_1 = arith.constant 0 : i32
    return %c0_i32, %c0_i32_0 : i32, i32
  }
  func.func @transform_6(%arg0: i32) -> (i32, i32) {
    %c0_i32 = arith.constant 0 : i32
    %c0_i32_0 = arith.constant 0 : i32
    %c0_i32_1 = arith.constant 0 : i32
    return %c0_i32, %c0_i32_0 : i32, i32
  }
  func.func @transform_7(%arg0: i32) -> (i32, i32) {
    %c0_i32 = arith.constant 0 : i32
    %c0_i32_0 = arith.constant 0 : i32
    %c0_i32_1 = arith.constant 0 : i32
    return %c0_i32, %c0_i32_0 : i32, i32
  }
  func.func @transform_8(%arg0: i32) -> (i32, i32, i32) {
    %c0_i32 = arith.constant 0 : i32
    %c0_i32_0 = arith.constant 0 : i32
    %c0_i32_1 = arith.constant 0 : i32
    return %arg0, %c0_i32, %c0_i32_0 : i32, i32, i32
  }
}

</mosaic_0001>

<bundles_post_ra>
// kernel: gelayer1_forward.1
= control target key start
LH: loop header
LB: loop body
LE: loop exit
PB: predicated region body
PF: predicated region fallthrough
CT: control target
= control target key end

     0   :  { %s1324_s27 = smov 0   ;;  %s2028_s0 = inlined_call_operand.vmem [shape: f32[2,4,256], index: 0, kind: input, shape index: {}]   ;;  %s2029_s1 = inlined_call_operand.vmem [shape: f32[9,1,256], index: 1, kind: input, shape index: {}]   ;;  %s2030_s2 = inlined_call_operand.vmem [shape: bf16[4,36], index: 2, kind: input, shape index: {}]   ;;  %s2031_s3 = inlined_call_operand.vmem [shape: f32[9,24,1], index: 3, kind: input, shape index: {}]   ;;  %s2032_s4 = inlined_call_operand.vmem [shape: bf16[4,24], index: 4, kind: input, shape index: {}]   ;;  %s2033_s5 = inlined_call_operand.vmem [shape: f32[4,1], index: 5, kind: input, shape index: {}]   ;;  %s2034_s6 = inlined_call_operand.vmem [shape: f32[24,1], index: 6, kind: input, shape index: {}]   ;;  %s2035_s7 = inlined_call_operand.vmem [shape: f32[4,1], index: 7, kind: input, shape index: {}]   ;;  %s2036_s8 = inlined_call_operand.vmem [shape: f32[2,4,256], index: 8, kind: output, shape index: {}]  }
   0x1 LB: > { %s1194_s28 = sadd.s32 4294967295, %s1268_s27   ;;  %p1198_p0 = scmp.ge.s32.totalorder %s1268_s27, 1  ;;  %s1268_s27 = sphi %s1324_s27, %s18_s27  }
   0x2   : > { %p262_p1 = scmp.lt.s32.totalorder %s1268_s27, 3 }
   0x4   : > { %p263_p2 = pnand %p1198_p0, %p262_p1 }
   0x6   : > { %266 = sbr.rel (%p263_p2) target bundleno = 756 (0x2f4), region = 52 }
   0xb   : > { %p296_p3 = scmp.lt.s32.totalorder %s1194_s28, 1  ;;  %s1270_s11 = smov 17   ;;  %v523_v17 = vld [vmem:[%s2033_s5] sm:$0xf]  ;;  %v1278_v18 = vmov 0   ;;  %v585_v19 = vld [vmem:[%s2031_s3 + $0x10] sm:$0xff]  ;;  %v318_v38 = vlaneseq }
   0xc   : > { %s1271_s12 = smov 16   ;;  %s1272_s13 = smov 15   ;;  %1259 = vset.pattern.permute.xlu1 %v1278_v18  ;;  %1261 = vset.pattern.permute.xlu0 %v1278_v18  ;;  %v1213_v20 = vld [vmem:[%s2031_s3 + $0x20] sm:$0xff]  ;;  %v1216_v22 = vld [vmem:[%s2031_s3 + $0x38] sm:$0xff]  ;;  %v1218_v27 = vld [vmem:[%s2031_s3 + $0x48] sm:$0xff]  ;;  %vm507_vm6 = vcmask 1043456  }
   0xd   : > { %s2069_s28 = smov (!%p296_p3, %s1194_s28), 1  ;;  %s1273_s14 = smov 1   ;;  %1260 = vset.pattern.permute.xlu2 %v1278_v18  ;;  %v1221_v31 = vld [vmem:[%s2031_s3 + $0x60] sm:$0xff]  ;;  %v584_v34 = vld [vmem:[%s2031_s3 + $0x8] sm:$0xff]  ;;  %v1224_v35 = vld [vmem:[%s2031_s3 + $0x78] sm:$0xff]  ;;  %v1415_v43 = vand.u32 127, %v318_v38 }
   0xe   : > { %s1240_s29 = sshll.u32 %s2069_s28, 3  ;;  %s1274_s15 = smov 127   ;;  %v583_v40 = vld [vmem:[%s2031_s3] sm:$0xff]  ;;  %v1212_v41 = vld [vmem:[%s2031_s3 + $0x18] sm:$0xff]  ;;  %v1235_v42 = vld [vmem:[%s2031_s3 + $0xd0] sm:$0xff]  ;;  %vm533_vm8 = vcmask 1041408  }
   0xf   : > { %s300_s10 = scalar_lea.vmem %s2028_s0, %s1240_s29  ;;  %s1275_s16 = smov 113   ;;  %v323_v44 = vld [vmem:[%s2029_s1] sm:$0x3]  ;;  %v1208_v45 = vld [vmem:[%s2029_s1 + $0xe] sm:$0x3]  ;;  %vm445_vm0 = vcmp.lt.s32.totalorder %v1415_v43, 112 }
  0x10   : > { %v1340_v0 = vld [vmem:[%s300_s10] sm:$0xff]  ;;  %s1276_s17 = smov 112   ;;  %s1277_s18 = smov 111   ;;  %v1206_v46 = vld [vmem:[%s2029_s1 + $0xa] sm:$0x3]  ;;  %vm320_vm1 = vcmp.lt.s32.totalorder %v1415_v43, 17 }
  0x11   : > { %309 = vst [vmem:[#allocation1] ss:$2 sm:$0xff] %v1340_v0  ;;  %v1428_v48 = vperm.slane %v323_v44, 0  ;;  %v1430_v49 = vperm.slane %v323_v44, 1  ;;  %v1203_v50 = vld [vmem:[%s2029_s1 + $0x2] sm:$0x3]  ;;  %s305_s20 = scalar_lea.vmem %s2036_s8, %s1240_s29 }
  0x12   : > { %vm403_vm2 = vcmp.lt.s32.totalorder %v1415_v43, 127  ;;  %vm340_vm3 = vcmp.lt.s32.totalorder %v1415_v43, 16  ;;  %v1205_v51 = vld [vmem:[%s2029_s1 + $0x6] sm:$0x3]  ;;  %v1440_v52 = vperm.slane %v1208_v45, 0  ;;  %v1442_v53 = vperm.slane %v1208_v45, 1 }
  0x13   : > { %v1214_v55 = vld [vmem:[%s2031_s3 + $0x28] sm:$0xff]  ;;  %v1447_v56 = vperm.slane %v1206_v46, 0  ;;  %v1449_v57 = vperm.slane %v1206_v46, 1  ;;  %v1215_v60 = vld [vmem:[%s2031_s3 + $0x30] sm:$0xff]  ;;  %v1458_v61 = vperm.slane %v1203_v50, 0  ;;  %v1460_v62 = vperm.slane %v1203_v50, 1 }
  0x14   : > { %vm382_vm4 = vcmp.lt.s32.totalorder %v1415_v43, 1  ;;  %vm424_vm5 = vcmp.lt.s32.totalorder %v1415_v43, 113  ;;  %vm466_vm7 = vcmp.lt.s32.totalorder %v1415_v43, 111  ;;  %vm361_vm9 = vcmp.lt.s32.totalorder %v1415_v43, 15 }
  0x15   : > { %vm529_vm10 = vcmask 293888   ;;  %vm576_vm11 = vcmask 1045504   ;;  %vm1088_vm12 = vcmask 195584  }
  0x18   : > { %v311_v1 = vld.sshfl [vmem:[#allocation1 + $0x8] sm:$0xff pattern:$0x75316420]  ;;  %v310_v2 = vld.sshfl [vmem:[#allocation1] sm:$0xff pattern:$0x75316420] }
  0x19   : > { %316 = vrot.lane.b32.xlu1 %v311_v1, %s1270_s11  ;;  %314 = vrot.lane.b32.xlu0 %v310_v2, %s1270_s11  ;;  %331 = vst [vmem:[#allocation1] ss:$2 sm:$0xff] %v1340_v0  ;;  %v1207_v1 = vld [vmem:[%s2029_s1 + $0xc] sm:$0x3]  ;;  %v1049_v2 = vld [vmem:[%s2034_s6 + $0x10] sm:$0xff] }
  0x20   : > { %v332_v3 = vld.sshfl [vmem:[#allocation1] sm:$0xff pattern:$0x75316420]  ;;  %v333_v4 = vld.sshfl [vmem:[#allocation1 + $0x8] sm:$0xff pattern:$0x75316420] }
  0x21   : > { %352 = vst [vmem:[#allocation1] ss:$2 sm:$0xff] %v1340_v0  ;;  %338 = vrot.lane.b32.xlu0 %v333_v4, %s1271_s12  ;;  %336 = vrot.lane.b32.xlu2 %v332_v3, %s1271_s12  ;;  %v1477_v4 = vperm.slane %v1205_v51, 0 }
  0x28   : > { %v353_v5 = vld.sshfl [vmem:[#allocation1] sm:$0xff pattern:$0x75316420]  ;;  %v354_v6 = vld.sshfl [vmem:[#allocation1 + $0x8] sm:$0xff pattern:$0x75316420] }
  0x29   : > { %373 = vst [vmem:[#allocation1] ss:$2 sm:$0xff] %v1340_v0  ;;  %357 = vrot.lane.b32.xlu2 %v353_v5, %s1272_s13  ;;  %v1479_v5 = vperm.slane %v1205_v51, 1 }
  0x30   : > { %v374_v7 = vld.sshfl [vmem:[#allocation1] sm:$0xff pattern:$0x75316420]  ;;  %v375_v8 = vld.sshfl [vmem:[#allocation1 + $0x8] sm:$0xff pattern:$0x75316420] }
  0x31   : > { %378 = vrot.lane.b32.xlu1 %v374_v7, %s1273_s14  ;;  %394 = vst [vmem:[#allocation1] ss:$2 sm:$0xff] %v1340_v0  ;;  %380 = vrot.lane.b32.xlu2 %v375_v8, %s1273_s14 }
  0x38   : > { %v395_v9 = vld.sshfl [vmem:[#allocation1] sm:$0xff pattern:$0x75316420]  ;;  %v396_v10 = vld.sshfl [vmem:[#allocation1 + $0x8] sm:$0xff pattern:$0x75316420] }
  0x39   : > { %399 = vrot.lane.b32.xlu1 %v395_v9, %s1274_s15  ;;  %415 = vst [vmem:[#allocation1] ss:$2 sm:$0xff] %v1340_v0 }
  0x40   : > { %v417_v11 = vld.sshfl [vmem:[#allocation1 + $0x8] sm:$0xff pattern:$0x75316420]  ;;  %v416_v12 = vld.sshfl [vmem:[#allocation1] sm:$0xff pattern:$0x75316420] }
  0x41   : > { %401 = vrot.lane.b32.xlu1 %v396_v10, %s1274_s15  ;;  %420 = vrot.lane.b32.xlu0 %v416_v12, %s1275_s16  ;;  %436 = vst [vmem:[#allocation1] ss:$2 sm:$0xff] %v1340_v0 }
  0x48   : > { %v437_v13 = vld.sshfl [vmem:[#allocation1] sm:$0xff pattern:$0x75316420]  ;;  %v438_v14 = vld.sshfl [vmem:[#allocation1 + $0x8] sm:$0xff pattern:$0x75316420] }
  0x49   : > { %422 = vrot.lane.b32.xlu1 %v417_v11, %s1275_s16  ;;  %457 = vst [vmem:[#allocation1] ss:$2 sm:$0xff] %v1340_v0  ;;  %441 = vrot.lane.b32.xlu2 %v437_v13, %s1276_s17  ;;  %v1491_v13 = vperm.slane %v1207_v1, 0 }
  0x50   : > { %v458_v15 = vld.sshfl [vmem:[#allocation1] sm:$0xff pattern:$0x75316420]  ;;  %v459_v16 = vld.sshfl [vmem:[#allocation1 + $0x8] sm:$0xff pattern:$0x75316420] }
  0x51   : > { %462 = vrot.lane.b32.xlu0 %v458_v15, %s1277_s18  ;;  %490 = vst [vmem:[#allocation1] ss:$2 sm:$0xff] %v1340_v0  ;;  %443 = vrot.lane.b32.xlu2 %v438_v14, %s1276_s17  ;;  %v1493_v14 = vperm.slane %v1207_v1, 1 }
  0x52   : > { %526 = vperm.xlu1 %1259, %v523_v17  }
  0x58   : > { %v1381_v23 = vld.sshfl [vmem:[#allocation1] sm:$0xff pattern:$0x75316420]  ;;  %v1383_v24 = vld.sshfl [vmem:[#allocation1 + $0x8] sm:$0xff pattern:$0x75316420] }
  0x59   : > { %464 = vrot.lane.b32.xlu0 %v459_v16, %s1277_s18  ;;  %1124 = vst [vmem:[#allocation1] ss:$2 sm:$0xff] %v1340_v0  ;;  %612 = vperm.xlu2 %1260, %v583_v40  }
  0x5a   : > { %622 = vperm.xlu1 %1259, %v585_v19  }
  0x61   : > { %359 = vrot.lane.b32.xlu0 %v354_v6, %s1272_s13  ;;  %v1209_v6 = vld [vmem:[%s2029_s1 + $0x10] sm:$0x3]  ;;  %671 = vperm.xlu2 %1260, %v1214_v55  }
  0x62   : > { %666 = vperm.xlu1 %1259, %v1213_v20   ;;  %v1496_v15 = vperm.slane %v1209_v6, 0  ;;  %v1498_v16 = vperm.slane %v1209_v6, 1 }
  0x64   : > { %2048 = vst [vmem:[#allocation2_spill] sm:$0xff] %v1498_v16 }
  0x69   : > { %617 = vperm.xlu0 %1261, %v584_v34  }
  0x6a   : > { %721 = vperm.xlu1 %1259, %v1216_v22  }
  0x71   : > { %661 = vperm.xlu0 %1261, %v1212_v41  }
  0x72   : > { %771 = vperm.xlu1 %1259, %v1218_v27  }
  0x79   : > { %716 = vperm.xlu0 %1261, %v1215_v60  }
  0x7a   : > { %802 = vperm.xlu1 %1259, %v1221_v31  }
  0x7b   : > { %v1376_v21 = vpop.permute.xlu2 %336 }
  0x82   : > { %857 = vperm.xlu1 %1259, %v1224_v35  }
  0x83   : > { %v1386_v26 = vpop.permute.xlu2 %357 }
  0x8a   : > { %1032 = vperm.xlu1 %1259, %v1235_v42  }
  0x8b   : > { %v317_v25 = vpop.permute.xlu1 %316  ;;  %v315_v28 = vpop.permute.xlu0 %314 }
  0x8c   : > { %v1393_v30 = vpop.permute.xlu2 %380  ;;  %v1474_v3 = vsel %vm320_vm1, %v315_v28, %v317_v25  ;;  %v322_v7 = vsel %vm320_vm1, %v317_v25, %v315_v28 }
  0x8d   : > { %v330_v1 = vmul.f32 %v1430_v49, %v1474_v3  ;;  %v1226_v3 = vld [vmem:[%s2031_s3 + $0x88] sm:$0xff] }
  0x92   : > { %1062 = vperm.xlu1 %1259, %v1049_v2  }
  0x93   : > { %v1398_v32 = vpop.permute.xlu0 %338 }
  0x94   : > { %v341_v17 = vsel %vm340_vm3, %v1376_v21, %v1398_v32  ;;  %v342_v18 = vsel %vm340_vm3, %v1398_v32, %v1376_v21  ;;  %v1217_v21 = vld [vmem:[%s2031_s3 + $0x40] sm:$0xff] }
  0x95   : > { %v350_v40 = vmul.f32 %v1458_v61, %v342_v18  ;;  %v351_v41 = vmul.f32 %v1460_v62, %v341_v17  ;;  %726 = vperm.xlu2 %1260, %v1217_v21   ;;  %v1222_v21 = vld [vmem:[%s2031_s3 + $0x68] sm:$0xff] }
  0xa3   : > { %v1391_v29 = vpop.permute.xlu1 %378  ;;  %v442_v36 = vpop.permute.xlu2 %441 }
  0xa4   : > { %v383_v22 = vsel %vm382_vm4, %v1391_v29, %v1393_v30  ;;  %v384_v25 = vsel %vm382_vm4, %v1393_v30, %v1391_v29 }
  0xa5   : > { %v392_v42 = vmul.f32 %v1477_v4, %v384_v25  ;;  %v393_v44 = vmul.f32 %v1479_v5, %v383_v22 }
  0xab   : > { %v400_v33 = vpop.permute.xlu1 %399  ;;  %v444_v47 = vpop.permute.xlu2 %443 }
  0xac   : > { %v446_v58 = vsel %vm445_vm0, %v442_v36, %v444_v47  ;;  %v447_v59 = vsel %vm445_vm0, %v444_v47, %v442_v36  ;;  %v1223_v36 = vld [vmem:[%s2031_s3 + $0x70] sm:$0xff] }
  0xad   : > { %v455_v8 = vmul.f32 %v1440_v52, %v446_v58  ;;  %v456_v9 = vmul.f32 %v1442_v53, %v447_v59  ;;  %812 = vperm.xlu0 %1261, %v1223_v36   ;;  %v1231_v36 = vld [vmem:[%s2031_s3 + $0xb0] sm:$0xff] }
  0xaf   : > { %v503_v27 = vrot.slane %v455_v8, 4  ;;  %v504_v28 = vrot.slane %v456_v9, 4 }
  0xb3   : > { %v421_v37 = vpop.permute.xlu0 %420  ;;  %v402_v39 = vpop.permute.xlu1 %401 }
  0xb4   : > { %v404_v63 = vsel %vm403_vm2, %v400_v33, %v402_v39  ;;  %v405_v0 = vsel %vm403_vm2, %v402_v39, %v400_v33  ;;  %v1204_v39 = vld [vmem:[%s2029_s1 + $0x4] sm:$0x3] }
  0xb5   : > { %v413_v11 = vmul.f32 %v1447_v56, %v404_v63  ;;  %v414_v12 = vmul.f32 %v1449_v57, %v405_v0  ;;  %v1542_v47 = vperm.slane %v1204_v39, 0  ;;  %v1544_v50 = vperm.slane %v1204_v39, 1  ;;  %867 = vperm.xlu0 %1261, %v1226_v3  }
  0xb6   : > { %v329_v63 = vmul.f32 %v1428_v48, %v322_v7  ;;  %v480_v0 = vrot.slane %v350_v40, 4  ;;  %v1220_v7 = vld [vmem:[%s2031_s3 + $0x58] sm:$0xff] }
  0xb7   : > { %v497_v32 = vrot.slane %v413_v11, 4  ;;  %v498_v33 = vrot.slane %v414_v12, 4  ;;  %v487_v11 = vrot.slane %v393_v44, 4  ;;  %781 = vperm.xlu2 %1260, %v1220_v7  }
  0xb9   : > { %v512_v51 = vsel %vm507_vm6, %v1381_v23, %v497_v32  ;;  %v481_v23 = vrot.slane %v351_v41, 4  ;;  %v1232_v32 = vld [vmem:[%s2031_s3 + $0xb8] sm:$0xff]  ;;  %v1608_v41 = vpop.permute.xlu2 %612 }
  0xbb   : > { %v423_v10 = vpop.permute.xlu1 %422 }
  0xbc   : > { %v425_v19 = vsel %vm424_vm5, %v421_v37, %v423_v10  ;;  %v426_v20 = vsel %vm424_vm5, %v423_v10, %v421_v37  ;;  %v486_v10 = vrot.slane %v392_v42, 4 }
  0xbd   : > { %v434_v29 = vmul.f32 %v1491_v13, %v425_v19  ;;  %v435_v30 = vmul.f32 %v1493_v14, %v426_v20  ;;  %v509_v19 = vsel %vm507_vm6, %v330_v1, %v481_v23 }
  0xbf   : > { %v514_v59 = vsel %vm507_vm6, %v434_v29, %v503_v27  ;;  %v515_v60 = vsel %vm507_vm6, %v435_v30, %v504_v28  ;;  %v522_v27 = vld [vmem:[%s2030_s2] sm:$0x3]  ;;  %v1219_v28 = vld [vmem:[%s2031_s3 + $0x50] sm:$0xff]  ;;  %v1230_v29 = vld [vmem:[%s2031_s3 + $0xa8] sm:$0xff] }
  0xc0   : > { %v518_v8 = vpack.c.bf16 %v514_v59, %v512_v51  ;;  %776 = vperm.xlu2 %1260, %v1219_v28   ;;  %v1233_v30 = vld [vmem:[%s2031_s3 + $0xc0] sm:$0xff] }
  0xc3   : > { %v463_v54 = vpop.permute.xlu0 %462 }
  0xc8   : > { %807 = vperm.xlu2 %1260, %v1222_v21  }
  0xcb   : > { %v465_v31 = vpop.permute.xlu0 %464 }
  0xcc   : > { %v467_v34 = vsel %vm466_vm7, %v463_v54, %v465_v31  ;;  %v468_v35 = vsel %vm466_vm7, %v465_v31, %v463_v54  ;;  %v513_v54 = vsel %vm507_vm6, %v1383_v24, %v498_v33  ;;  %v1229_v31 = vld [vmem:[%s2031_s3 + $0xa0] sm:$0xff] }
  0xcd   : > { %v476_v37 = vmul.f32 %v1496_v15, %v467_v34  ;;  %v477_v38 = vmul.f32 %v1498_v16, %v468_v35  ;;  %v519_v9 = vpack.c.bf16 %v515_v60, %v513_v54  ;;  %922 = vperm.xlu0 %1261, %v1229_v31   ;;  %v1225_v33 = vld [vmem:[%s2031_s3 + $0x80] sm:$0xff]  ;;  %v1228_v34 = vld [vmem:[%s2031_s3 + $0x98] sm:$0xff]  ;;  %v1227_v35 = vld [vmem:[%s2031_s3 + $0x90] sm:$0xff] }
  0xcf   : > { %v520_v45 = vpack.c.bf16 %v476_v37, %v476_v37  ;;  %v521_v46 = vpack.c.bf16 %v477_v38, %v477_v38  ;;  %v527_v37 = vpop.permute.xlu1 %526 }
  0xd0   : > { %862 = vperm.xlu2 %1260, %v1225_v33  }
  0xd1   : > { %v535_v55 = vsel %vm533_vm8, %v520_v45, 0  ;;  %v538_v58 = vsel %vm533_vm8, %v521_v46, 0 }
  0xd2   : > { %545 = vmatpush.bf16.msra.mxu0 %v535_v55  ;;  %558 = vmatpush.bf16.msra.mxu1 %v538_v58 }
  0xd3   : > { %v360_v2 = vpop.permute.xlu0 %359 }
  0xd4   : > { %v362_v24 = vsel %vm361_vm9, %v1386_v26, %v360_v2  ;;  %v363_v6 = vsel %vm361_vm9, %v360_v2, %v1386_v26  ;;  %v508_v26 = vsel %vm507_vm6, %v329_v63, %v480_v0 }
  0xd5   : > { %v371_v12 = vmul.f32 %v1542_v47, %v363_v6  ;;  %v372_v17 = vmul.f32 %v1544_v50, %v362_v24  ;;  %977 = vperm.xlu0 %1261, %v1232_v32   ;;  %v1625_v6 = vpop.permute.xlu2 %671 }
  0xd6   : > { %546 = vmatpush.bf16.msra.mxu0 %v518_v8  ;;  %559 = vmatpush.bf16.msra.mxu1 %v519_v9 }
  0xd7   : > { %v510_v18 = vsel %vm507_vm6, %v371_v12, %v486_v10  ;;  %v511_v20 = vsel %vm507_vm6, %v372_v17, %v487_v11  ;;  %v1668_v17 = vpop.permute.xlu1 %622 }
  0xd8   : > { %v516_v22 = vpack.c.bf16 %v510_v18, %v508_v26  ;;  %v517_v25 = vpack.c.bf16 %v511_v20, %v509_v19  ;;  %912 = vperm.xlu2 %1260, %v1227_v35  }
  0xda   : > { %547 = vmatpush.bf16.msra.mxu0 %v516_v22  ;;  %560 = vmatpush.bf16.msra.mxu1 %v517_v25 }
  0xdb   : > { %v1658_v11 = vpop.permute.xlu0 %617 }
  0xdd   : > { %1210 = vmatmul.msk.bf16.vlgmr.msra.gmra.mxu0 %vm529_vm10, %v522_v27  ;;  %1211 = vmatmul.msk.bf16.vlgmr.msra.gmra.mxu1 %vm529_vm10, %v522_v27 }
  0xde   : > { %917 = vperm.xlu0 %1261, %v1228_v34  }
  0xdf   : > { %v1680_v19 = vpop.permute.xlu1 %666 }
  0xe0   : > { %967 = vperm.xlu2 %1260, %v1230_v29  }
  0xe3   : > { %v1670_v26 = vpop.permute.xlu0 %661 }
  0xe6   : > { %972 = vperm.xlu0 %1261, %v1231_v36  }
  0xe7   : > { %v1692_v25 = vpop.permute.xlu1 %721 }
  0xe8   : > { %1022 = vperm.xlu2 %1260, %v1233_v30  }
  0xeb   : > { %v1684_v20 = vpop.permute.xlu0 %716 }
  0xef   : > { %v1642_v3 = vpop.permute.xlu2 %726  ;;  %v1710_v31 = vpop.permute.xlu1 %771 }
  0xf7   : > { %v1722_v33 = vpop.permute.xlu1 %802 }
  0xff   : > { %v1734_v36 = vpop.permute.xlu1 %857 }
 0x100   : > { %2053 = vst [vmem:[#allocation7_spill] sm:$0xff] %v1734_v36 }
 0x111   : > { %v1652_v10 = vpop.permute.xlu2 %781 }
 0x11a   : > { %v1666_v12 = vpop.permute.xlu2 %776 }
 0x11f   : > { %v1700_v27 = vpop.permute.xlu0 %812 }
 0x122   : > { %v1678_v18 = vpop.permute.xlu2 %807 }
 0x127   : > { %v1712_v21 = vpop.permute.xlu0 %867 }
 0x12a   : > { %v1690_v22 = vpop.permute.xlu2 %862 }
 0x12b   : > { %2049 = vst [vmem:[#allocation3_spill] sm:$0xff] %v1690_v22 }
 0x132   : > { %v1702_v28 = vpop.permute.xlu2 %912 }
 0x133   : > { %2050 = vst [vmem:[#allocation4_spill] sm:$0xff] %v1702_v28 }
 0x13a   : > { %v1716_v32 = vpop.permute.xlu2 %967 }
 0x13b   : > { %2051 = vst [vmem:[#allocation5_spill] sm:$0xff] %v1716_v32 }
 0x13f   : > { %v1724_v34 = vpop.permute.xlu0 %922 }
 0x142   : > { %v1732_v35 = vpop.permute.xlu2 %1022 }
 0x143   : > { %2052 = vst [vmem:[#allocation6_spill] sm:$0xff] %v1732_v35  ;;  %v1048_v35 = vld [vmem:[%s2034_s6 + $0x8] sm:$0xff] }
 0x147   : > { %v1736_v29 = vpop.permute.xlu0 %977 }
 0x15a   : > { %v549_v38 = vpop.f32.mrf.mxu0  ;;  %v562_v39 = vpop.f32.mrf.mxu1 }
 0x15b   : > { %v550_v40 = vadd.f32 %v549_v38, %v527_v37  ;;  %v563_v44 = vadd.f32 %v562_v39, %v527_v37  ;;  %v1744_v37 = vpop.permute.xlu1 %1032  ;;  %v1748_v38 = vpop.permute.xlu0 %917 }
 0x15c   : > { %2054 = vst [vmem:[#allocation8_spill] sm:$0xff] %v1744_v37 }
 0x15d   : > { %v566_v42 = vmax.f32 %v550_v40, 0.0  ;;  %v567_v60 = vmax.f32 %v563_v44, 0.0  ;;  %2055 = vst [vmem:[#allocation9_spill] sm:$0xff] %v1748_v38 }
 0x15f   : > { %v568_v45 = vperm.slane %v566_v42, 0  ;;  %v570_v46 = vperm.slane %v566_v42, 1  ;;  %v572_v51 = vperm.slane %v566_v42, 2  ;;  %v574_v54 = vperm.slane %v566_v42, 3 }
 0x160   : > { %v573_v1 = vperm.slane %v567_v60, 2  ;;  %v575_v23 = vperm.slane %v567_v60, 3  ;;  %v569_v2 = vperm.slane %v567_v60, 0  ;;  %v571_v24 = vperm.slane %v567_v60, 1 }
 0x161   : > { %v1611_v55 = vsel %vm576_vm11, %v568_v45, %v570_v46  ;;  %v1614_v58 = vsel %vm507_vm6, %v570_v46, %v572_v51  ;;  %v1617_v59 = vsel %vm533_vm8, %v572_v51, %v574_v54 }
 0x162   : > { %v551_v63 = vpop.f32.mrf.mxu0  ;;  %v564_v0 = vpop.f32.mrf.mxu1  ;;  %590 = vrot.lane.b32.xlu1 %v1617_v59, %s1270_s11  ;;  %588 = vrot.lane.b32.xlu0 %v1614_v58, %s1270_s11  ;;  %v1628_v8 = vsel %vm533_vm8, %v573_v1, %v575_v23  ;;  %v1631_v9 = vsel %vm576_vm11, %v569_v2, %v571_v24  ;;  %v1634_v7 = vsel %vm507_vm6, %v571_v24, %v573_v1 }
 0x163   : > { %586 = vrot.lane.b32.xlu2 %v1611_v55, %s1270_s11  ;;  %v1764_v44 = vpop.permute.xlu1 %1062  ;;  %v1766_v45 = vpop.permute.xlu0 %972  ;;  %v1234_v63 = vld [vmem:[%s2031_s3 + $0xc8] sm:$0xff] }
 0x164   : > { %2056 = vst [vmem:[#allocation10_spill] sm:$0xff] %v1764_v44 }
 0x165   : > { %2057 = vst [vmem:[#allocation11_spill] sm:$0xff] %v1766_v45 }
 0x16a   : > { %596 = vrot.lane.b32.xlu1 %v1628_v8, %s1270_s11  ;;  %594 = vrot.lane.b32.xlu0 %v1634_v7, %s1270_s11 }
 0x16b   : > { %592 = vrot.lane.b32.xlu2 %v1631_v9, %s1270_s11 }
 0x172   : > { %637 = vrot.lane.b32.xlu1 %v1614_v58, %s1271_s12  ;;  %641 = vrot.lane.b32.xlu0 %v1631_v9, %s1271_s12 }
 0x173   : > { %635 = vrot.lane.b32.xlu2 %v1611_v55, %s1271_s12 }
 0x17a   : > { %643 = vrot.lane.b32.xlu1 %v1634_v7, %s1271_s12  ;;  %690 = vrot.lane.b32.xlu0 %v1611_v55, %s1272_s13 }
 0x17b   : > { %639 = vrot.lane.b32.xlu2 %v1617_v59, %s1271_s12 }
 0x182   : > { %692 = vrot.lane.b32.xlu1 %v1614_v58, %s1272_s13  ;;  %696 = vrot.lane.b32.xlu0 %v1631_v9, %s1272_s13 }
 0x183   : > { %645 = vrot.lane.b32.xlu2 %v1628_v8, %s1271_s12 }
 0x18a   : > { %698 = vrot.lane.b32.xlu1 %v1634_v7, %s1272_s13  ;;  %745 = vrot.lane.b32.xlu0 %v1611_v55, %s1273_s14 }
 0x18b   : > { %694 = vrot.lane.b32.xlu2 %v1617_v59, %s1272_s13 }
 0x192   : > { %747 = vrot.lane.b32.xlu1 %v1614_v58, %s1273_s14  ;;  %751 = vrot.lane.b32.xlu0 %v1631_v9, %s1273_s14 }
 0x193   : > { %700 = vrot.lane.b32.xlu2 %v1628_v8, %s1272_s13 }
 0x19a   : > { %755 = vrot.lane.b32.xlu1 %v1628_v8, %s1273_s14  ;;  %835 = vrot.lane.b32.xlu0 %v1617_v59, %s1274_s15 }
 0x19b   : > { %749 = vrot.lane.b32.xlu2 %v1617_v59, %s1273_s14 }
 0x1a2   : > { %841 = vrot.lane.b32.xlu1 %v1628_v8, %s1274_s15  ;;  %945 = vrot.lane.b32.xlu0 %v1617_v59, %s1276_s17 }
 0x1a3   : > { %753 = vrot.lane.b32.xlu2 %v1634_v7, %s1273_s14 }
 0x1aa   : > { %890 = vrot.lane.b32.xlu1 %v1617_v59, %s1275_s16  ;;  %833 = vrot.lane.b32.xlu0 %v1614_v58, %s1274_s15 }
 0x1ab   : > { %896 = vrot.lane.b32.xlu2 %v1628_v8, %s1275_s16 }
 0x1b2   : > { %951 = vrot.lane.b32.xlu1 %v1628_v8, %s1276_s17  ;;  %1000 = vrot.lane.b32.xlu0 %v1617_v59, %s1277_s18 }
 0x1b3   : > { %831 = vrot.lane.b32.xlu2 %v1611_v55, %s1274_s15 }
 0x1ba   : > { %837 = vrot.lane.b32.xlu1 %v1631_v9, %s1274_s15  ;;  %888 = vrot.lane.b32.xlu0 %v1614_v58, %s1275_s16 }
 0x1bb   : > { %839 = vrot.lane.b32.xlu2 %v1634_v7, %s1274_s15 }
 0x1bd   : > { %v587_v30 = vpop.permute.xlu2 %586 }
 0x1c2   : > { %1006 = vrot.lane.b32.xlu1 %v1628_v8, %s1277_s18  ;;  %941 = vrot.lane.b32.xlu0 %v1611_v55, %s1276_s17 }
 0x1c3   : > { %886 = vrot.lane.b32.xlu2 %v1611_v55, %s1275_s16 }
 0x1c5   : > { %v593_v39 = vpop.permute.xlu2 %592 }
 0x1c6   : > { %v598_v40 = vsel %vm320_vm1, %v587_v30, %v593_v39  ;;  %v601_v42 = vsel %vm320_vm1, %v593_v39, %v587_v30 }
 0x1c7   : > { %v605_v32 = vmul.f32 %v598_v40, %v1430_v49 }
 0x1c9   : > { %v626_v40 = vmul.f32 %v1608_v41, %v605_v32 }
 0x1ca   : > { %892 = vrot.lane.b32.xlu1 %v1631_v9, %s1275_s16  ;;  %949 = vrot.lane.b32.xlu0 %v1634_v7, %s1276_s17 }
 0x1cb   : > { %894 = vrot.lane.b32.xlu2 %v1634_v7, %s1275_s16 }
 0x1cd   : > { %v636_v46 = vpop.permute.xlu2 %635 }
 0x1d2   : > { %943 = vrot.lane.b32.xlu1 %v1614_v58, %s1276_s17  ;;  %1002 = vrot.lane.b32.xlu0 %v1631_v9, %s1277_s18 }
 0x1d3   : > { %947 = vrot.lane.b32.xlu2 %v1631_v9, %s1276_s17 }
 0x1d4   : > { %v591_v51 = vpop.permute.xlu1 %590  ;;  %v589_v54 = vpop.permute.xlu0 %588 }
 0x1d5   : > { %v1774_v60 = vpop.permute.xlu2 %639 }
 0x1da   : > { %996 = vrot.lane.b32.xlu1 %v1611_v55, %s1277_s18  ;;  %1027 = vperm.xlu0 %1261, %v1234_v63   ;;  %v1082_v63 = vld [vmem:[%s2035_s7] sm:$0xf] }
 0x1db   : > { %998 = vrot.lane.b32.xlu2 %v1614_v58, %s1277_s18 }
 0x1dc   : > { %v597_v0 = vpop.permute.xlu1 %596  ;;  %v595_v2 = vpop.permute.xlu0 %594 }
 0x1dd   : > { %v1785_v1 = vsel %vm320_vm1, %v591_v51, %v597_v0  ;;  %v1789_v23 = vsel %vm320_vm1, %v597_v0, %v591_v51  ;;  %v646_v24 = vpop.permute.xlu2 %645  ;;  %v599_v30 = vsel %vm320_vm1, %v589_v54, %v595_v2  ;;  %v602_v39 = vsel %vm320_vm1, %v595_v2, %v589_v54 }
 0x1de   : > { %v604_v0 = vmul.f32 %v601_v42, %v1428_v48 }
 0x1e0   : > { %v625_v42 = vmul.f32 %v1608_v41, %v604_v0 }
 0x1e2   : > { %1004 = vrot.lane.b32.xlu1 %v1634_v7, %s1277_s18  ;;  %1085 = vperm.xlu0 %1261, %v1082_v63  }
 0x1e3   : > { %1057 = vperm.xlu2 %1260, %v1048_v35   ;;  %v1047_v35 = vld [vmem:[%s2034_s6] sm:$0xff] }
 0x1e4   : > { %v638_v51 = vpop.permute.xlu1 %637  ;;  %v642_v45 = vpop.permute.xlu0 %641 }
 0x1e5   : > { %v647_v54 = vsel %vm340_vm3, %v636_v46, %v642_v45  ;;  %v650_v2 = vsel %vm340_vm3, %v642_v45, %v636_v46  ;;  %v695_v38 = vpop.permute.xlu2 %694  ;;  %v606_v46 = vmul.f32 %v602_v39, %v1428_v48 }
 0x1e6   : > { %v653_v28 = vmul.f32 %v650_v2, %v1458_v61  ;;  %v654_v22 = vmul.f32 %v647_v54, %v1460_v62  ;;  %v607_v2 = vmul.f32 %v599_v30, %v1430_v49 }
 0x1e8   : > { %v674_v63 = vmul.f32 %v1670_v26, %v653_v28  ;;  %v675_v36 = vmul.f32 %v1670_v26, %v654_v22  ;;  %v627_v26 = vmul.f32 %v1658_v11, %v606_v46  ;;  %v628_v22 = vmul.f32 %v1658_v11, %v607_v2 }
 0x1ea   : > { %1052 = vperm.xlu1 %1259, %v1047_v35   ;;  %v680_v44 = vadd.f32 %v674_v63, %v625_v42  ;;  %v681_v45 = vadd.f32 %v675_v36, %v626_v40 }
 0x1ec   : > { %v644_v54 = vpop.permute.xlu1 %643  ;;  %v691_v16 = vpop.permute.xlu0 %690 }
 0x1ed   : > { %v648_v37 = vsel %vm340_vm3, %v638_v51, %v644_v54  ;;  %v651_v0 = vsel %vm340_vm3, %v644_v54, %v638_v51  ;;  %v701_v30 = vpop.permute.xlu2 %700 }
 0x1ee   : > { %v655_v41 = vmul.f32 %v651_v0, %v1458_v61  ;;  %v656_v28 = vmul.f32 %v648_v37, %v1460_v62 }
 0x1f0   : > { %v676_v32 = vmul.f32 %v1680_v19, %v655_v41  ;;  %v677_v36 = vmul.f32 %v1680_v19, %v656_v28 }
 0x1f2   : > { %v682_v39 = vadd.f32 %v676_v32, %v627_v26  ;;  %v683_v35 = vadd.f32 %v677_v36, %v628_v22 }
 0x1f4   : > { %v693_v42 = vpop.permute.xlu1 %692  ;;  %v697_v40 = vpop.permute.xlu0 %696 }
 0x1f5   : > { %v702_v51 = vsel %vm361_vm9, %v691_v16, %v697_v40  ;;  %v705_v63 = vsel %vm361_vm9, %v697_v40, %v691_v16  ;;  %v750_v19 = vpop.permute.xlu2 %749 }
 0x1f6   : > { %v708_v37 = vmul.f32 %v705_v63, %v1542_v47  ;;  %v709_v46 = vmul.f32 %v702_v51, %v1544_v50  ;;  %v609_v63 = vmul.f32 %v1785_v1, %v1430_v49 }
 0x1f8   : > { %v729_v11 = vmul.f32 %v1684_v20, %v708_v37  ;;  %v730_v2 = vmul.f32 %v1684_v20, %v709_v46  ;;  %v649_v20 = vsel %vm340_vm3, %v1774_v60, %v646_v24 }
 0x1fa   : > { %v735_v54 = vadd.f32 %v729_v11, %v680_v44  ;;  %v736_v0 = vadd.f32 %v730_v2, %v681_v45  ;;  %v652_v44 = vsel %vm340_vm3, %v646_v24, %v1774_v60  ;;  %v704_v2 = vsel %vm361_vm9, %v695_v38, %v701_v30 }
 0x1fb   : > { %v657_v37 = vmul.f32 %v652_v44, %v1458_v61  ;;  %v707_v60 = vsel %vm361_vm9, %v701_v30, %v695_v38  ;;  %v817_v38 = vmul.f32 %v1678_v18, %v1614_v58  ;;  %v818_v30 = vmul.f32 %v1678_v18, %v1634_v7 }
 0x1fc   : > { %v699_v41 = vpop.permute.xlu1 %698  ;;  %v746_v22 = vpop.permute.xlu0 %745  ;;  %v816_v44 = vmul.f32 %v1722_v33, %v1631_v9 }
 0x1fd   : > { %v703_v28 = vsel %vm361_vm9, %v693_v42, %v699_v41  ;;  %v706_v26 = vsel %vm361_vm9, %v699_v41, %v693_v42  ;;  %v608_v42 = vmul.f32 %v1789_v23, %v1428_v48  ;;  %v754_v46 = vpop.permute.xlu2 %753  ;;  %v712_v41 = vmul.f32 %v707_v60, %v1542_v47 }
 0x1fe   : > { %v710_v16 = vmul.f32 %v706_v26, %v1542_v47  ;;  %v711_v32 = vmul.f32 %v703_v28, %v1544_v50  ;;  %v713_v28 = vmul.f32 %v704_v2, %v1544_v50  ;;  %v678_v18 = vmul.f32 %v1625_v6, %v657_v37 }
 0x1ff   : > { %v820_v60 = vmul.f32 %v1700_v27, %v1628_v8 }
 0x200   : > { %v731_v36 = vmul.f32 %v1692_v25, %v710_v16  ;;  %v732_v40 = vmul.f32 %v1692_v25, %v711_v32  ;;  %v658_v25 = vmul.f32 %v649_v20, %v1460_v62  ;;  %v630_v32 = vmul.f32 %v1668_v17, %v609_v63 }
 0x202   : > { %v737_v45 = vadd.f32 %v731_v36, %v682_v39  ;;  %v738_v51 = vadd.f32 %v732_v40, %v683_v35  ;;  %v679_v36 = vmul.f32 %v1625_v6, %v658_v25 }
 0x204   : > { %v748_v11 = vpop.permute.xlu1 %747  ;;  %v752_v23 = vpop.permute.xlu0 %751 }
 0x205   : > { %v758_v24 = vsel %vm382_vm4, %v748_v11, %v754_v46  ;;  %v761_v48 = vsel %vm382_vm4, %v754_v46, %v748_v11  ;;  %v757_v62 = vsel %vm382_vm4, %v746_v22, %v752_v23  ;;  %v760_v1 = vsel %vm382_vm4, %v752_v23, %v746_v22 }
 0x206   : > { %v765_v49 = vmul.f32 %v761_v48, %v1477_v4  ;;  %v766_v61 = vmul.f32 %v758_v24, %v1479_v5  ;;  %v763_v39 = vmul.f32 %v760_v1, %v1477_v4  ;;  %v764_v35 = vmul.f32 %v757_v62, %v1479_v5 }
 0x207   : > { %v629_v22 = vmul.f32 %v1668_v17, %v608_v42  ;;  %v733_v17 = vmul.f32 %v1642_v3, %v712_v41  ;;  %v734_v42 = vmul.f32 %v1642_v3, %v713_v28 }
 0x208   : > { %v786_v26 = vmul.f32 %v1666_v12, %v765_v49  ;;  %v787_v16 = vmul.f32 %v1666_v12, %v766_v61  ;;  %v784_v58 = vmul.f32 %v1710_v31, %v763_v39  ;;  %v785_v7 = vmul.f32 %v1710_v31, %v764_v35 }
 0x209   : > { %v815_v12 = vmul.f32 %v1722_v33, %v1611_v55  ;;  %v684_v55 = vadd.f32 %v678_v18, %v629_v22  ;;  %v685_v33 = vadd.f32 %v679_v36, %v630_v32 }
 0x20a   : > { %v792_v40 = vadd.f32 %v786_v26, %v737_v45  ;;  %v793_v47 = vadd.f32 %v787_v16, %v738_v51  ;;  %v790_v20 = vadd.f32 %v784_v58, %v735_v54  ;;  %v791_v50 = vadd.f32 %v785_v7, %v736_v0 }
 0x20b   : > { %v739_v25 = vadd.f32 %v733_v17, %v684_v55  ;;  %v740_v46 = vadd.f32 %v734_v42, %v685_v33 }
 0x20c   : > { %v756_v63 = vpop.permute.xlu1 %755  ;;  %v1894_v31 = vadd.f32 %v817_v38, %v792_v40  ;;  %v1896_v37 = vadd.f32 %v818_v30, %v793_v47  ;;  %v836_v0 = vpop.permute.xlu0 %835  ;;  %v1902_v9 = vadd.f32 %v815_v12, %v790_v20  ;;  %v1904_v45 = vadd.f32 %v816_v44, %v791_v50 }
 0x20d   : > { %v759_v6 = vsel %vm382_vm4, %v750_v19, %v756_v63  ;;  %v762_v54 = vsel %vm382_vm4, %v756_v63, %v750_v19  ;;  %v819_v19 = vmul.f32 %v1700_v27, %v1617_v59 }
 0x20e   : > { %v767_v3 = vmul.f32 %v762_v54, %v1477_v4  ;;  %v768_v51 = vmul.f32 %v759_v6, %v1479_v5  ;;  %v897_v4 = vpop.permute.xlu2 %896 }
 0x210   : > { %v788_v11 = vmul.f32 %v1652_v10, %v767_v3  ;;  %v789_v2 = vmul.f32 %v1652_v10, %v768_v51  ;;  %v2058_v3 = vld [vmem:[#allocation2_spill] sm:$0xff]  ;;  %v2059_v51 = vld [vmem:[#allocation8_spill] sm:$0xff] }
 0x212   : > { %v794_v24 = vadd.f32 %v788_v11, %v739_v25  ;;  %v795_v48 = vadd.f32 %v789_v2, %v740_v46 }
 0x214   : > { %v842_v23 = vpop.permute.xlu1 %841  ;;  %v825_v49 = vadd.f32 %v819_v19, %v794_v24  ;;  %v826_v61 = vadd.f32 %v820_v60, %v795_v48  ;;  %v946_v62 = vpop.permute.xlu0 %945  ;;  %v2060_v48 = vld [vmem:[#allocation10_spill] sm:$0xff] }
 0x215   : > { %v845_v10 = vsel %vm403_vm2, %v836_v0, %v842_v23  ;;  %v848_v59 = vsel %vm403_vm2, %v842_v23, %v836_v0 }
 0x216   : > { %v832_v38 = vpop.permute.xlu2 %831  ;;  %v853_v41 = vmul.f32 %v845_v10, %v1447_v56  ;;  %v854_v28 = vmul.f32 %v848_v59, %v1449_v57 }
 0x218   : > { %v874_v18 = vmul.f32 %v1712_v21, %v853_v41  ;;  %v875_v36 = vmul.f32 %v1712_v21, %v854_v28 }
 0x21a   : > { %v880_v12 = vadd.f32 %v874_v18, %v825_v49  ;;  %v881_v17 = vadd.f32 %v875_v36, %v826_v61 }
 0x21c   : > { %v891_v5 = vpop.permute.xlu1 %890  ;;  %v834_v1 = vpop.permute.xlu0 %833 }
 0x21d   : > { %v900_v8 = vsel %vm424_vm5, %v891_v5, %v897_v4  ;;  %v903_v27 = vsel %vm424_vm5, %v897_v4, %v891_v5 }
 0x21e   : > { %v840_v35 = vpop.permute.xlu2 %839  ;;  %v908_v32 = vmul.f32 %v900_v8, %v1491_v13  ;;  %v909_v58 = vmul.f32 %v903_v27, %v1493_v14 }
 0x220   : > { %v929_v20 = vmul.f32 %v1724_v34, %v908_v32  ;;  %v930_v50 = vmul.f32 %v1724_v34, %v909_v58 }
 0x222   : > { %v935_v0 = vadd.f32 %v929_v20, %v880_v12  ;;  %v936_v55 = vadd.f32 %v930_v50, %v881_v17  ;;  %v2061_v12 = vld [vmem:[#allocation7_spill] sm:$0xff] }
 0x224   : > { %v952_v30 = vpop.permute.xlu1 %951  ;;  %v1001_v39 = vpop.permute.xlu0 %1000 }
 0x225   : > { %v955_v16 = vsel %vm445_vm0, %v946_v62, %v952_v30  ;;  %v958_v22 = vsel %vm445_vm0, %v952_v30, %v946_v62 }
 0x226   : > { %v963_v40 = vmul.f32 %v955_v16, %v1440_v52  ;;  %v964_v47 = vmul.f32 %v958_v22, %v1442_v53  ;;  %v887_v44 = vpop.permute.xlu2 %886  ;;  %v844_v16 = vsel %vm403_vm2, %v834_v1, %v840_v35  ;;  %v847_v22 = vsel %vm403_vm2, %v840_v35, %v834_v1 }
 0x228   : > { %v984_v42 = vmul.f32 %v1736_v29, %v963_v40  ;;  %v985_v63 = vmul.f32 %v1736_v29, %v964_v47  ;;  %v851_v40 = vmul.f32 %v844_v16, %v1447_v56  ;;  %v2067_v16 = vld [vmem:[#allocation6_spill] sm:$0xff] }
 0x22a   : > { %v990_v11 = vadd.f32 %v984_v42, %v935_v0  ;;  %v991_v2 = vadd.f32 %v985_v63, %v936_v55  ;;  %v2062_v63 = vld [vmem:[#allocation3_spill] sm:$0xff] }
 0x22c   : > { %v838_v26 = vpop.permute.xlu1 %837  ;;  %v889_v7 = vpop.permute.xlu0 %888 }
 0x22d   : > { %v843_v27 = vsel %vm403_vm2, %v832_v38, %v838_v26  ;;  %v846_v41 = vsel %vm403_vm2, %v838_v26, %v832_v38  ;;  %v852_v38 = vmul.f32 %v847_v22, %v1449_v57 }
 0x22e   : > { %v895_v61 = vpop.permute.xlu2 %894  ;;  %v849_v32 = vmul.f32 %v843_v27, %v1447_v56  ;;  %v850_v58 = vmul.f32 %v846_v41, %v1449_v57 }
 0x22f   : > { %v899_v26 = vsel %vm424_vm5, %v889_v7, %v895_v61  ;;  %v902_v1 = vsel %vm424_vm5, %v895_v61, %v889_v7 }
 0x230   : > { %v870_v57 = vmul.f32 %v2061_v12, %v849_v32  ;;  %v871_v17 = vmul.f32 %v2061_v12, %v850_v58  ;;  %v906_v42 = vmul.f32 %v899_v26, %v1491_v13  ;;  %v907_v7 = vmul.f32 %v902_v1, %v1493_v14 }
 0x234   : > { %v1007_v6 = vpop.permute.xlu1 %1006  ;;  %v942_v29 = vpop.permute.xlu0 %941 }
 0x235   : > { %v1010_v54 = vsel %vm466_vm7, %v1001_v39, %v1007_v6  ;;  %v1013_v21 = vsel %vm466_vm7, %v1007_v6, %v1001_v39  ;;  %v872_v6 = vmul.f32 %v2062_v63, %v851_v40 }
 0x236   : > { %v1018_v33 = vmul.f32 %v1010_v54, %v1496_v15  ;;  %v1019_v34 = vmul.f32 %v1013_v21, %v2058_v3  ;;  %v948_v28 = vpop.permute.xlu2 %947  ;;  %v873_v54 = vmul.f32 %v2062_v63, %v852_v38 }
 0x237   : > { %v953_v21 = vsel %vm445_vm0, %v942_v29, %v948_v28  ;;  %v956_v0 = vsel %vm445_vm0, %v948_v28, %v942_v29  ;;  %v2064_v29 = vld [vmem:[#allocation9_spill] sm:$0xff]  ;;  %v878_v61 = vadd.f32 %v872_v6, %v1894_v31 }
 0x238   : > { %v1039_v25 = vmul.f32 %v2059_v51, %v1018_v33  ;;  %v1040_v46 = vmul.f32 %v2059_v51, %v1019_v34  ;;  %v2063_v51 = vld [vmem:[#allocation4_spill] sm:$0xff]  ;;  %v1077_v6 = vld [vmem:[%s2032_s4] sm:$0x3] }
 0x23a   : > { %v1045_v19 = vadd.f32 %v1039_v25, %v990_v11  ;;  %v1046_v60 = vadd.f32 %v1040_v46, %v991_v2  ;;  %v876_v11 = vadd.f32 %v870_v57, %v1902_v9  ;;  %v877_v2 = vadd.f32 %v871_v17, %v1904_v45 }
 0x23c   : > { %v893_v24 = vpop.permute.xlu1 %892  ;;  %v1069_v23 = vadd.f32 %v2060_v48, %v1045_v19  ;;  %v1070_v49 = vadd.f32 %v2060_v48, %v1046_v60  ;;  %v950_v59 = vpop.permute.xlu0 %949  ;;  %v927_v19 = vmul.f32 %v2064_v29, %v906_v42  ;;  %v928_v60 = vmul.f32 %v2064_v29, %v907_v7 }
 0x23d   : > { %v898_v18 = vsel %vm424_vm5, %v887_v44, %v893_v24  ;;  %v901_v36 = vsel %vm424_vm5, %v893_v24, %v887_v44  ;;  %v959_v24 = vmul.f32 %v953_v21, %v1440_v52  ;;  %v960_v48 = vmul.f32 %v956_v0, %v1442_v53  ;;  %v1125_v0 = vld.sshfl [vmem:[#allocation1] sm:$0xff pattern:$0x75316420] }
 0x23e   : > { %v1075_v4 = vmax.f32 %v1069_v23, 0.0  ;;  %v1076_v62 = vmax.f32 %v1070_v49, 0.0  ;;  %v904_v47 = vmul.f32 %v898_v18, %v1491_v13  ;;  %v905_v20 = vmul.f32 %v901_v36, %v1493_v14  ;;  %v999_v14 = vpop.permute.xlu2 %998 }
 0x240   : > { %v1080_v5 = vpack.c.bf16 %v1075_v4, %v1075_v4  ;;  %v1081_v30 = vpack.c.bf16 %v1076_v62, %v1076_v62  ;;  %v925_v25 = vmul.f32 %v2063_v51, %v904_v47  ;;  %v926_v46 = vmul.f32 %v2063_v51, %v905_v20  ;;  %v2065_v62 = vld [vmem:[#allocation11_spill] sm:$0xff] }
 0x241   : > { %v879_v4 = vadd.f32 %v873_v54, %v1896_v37  ;;  %v2066_v37 = vld [vmem:[#allocation5_spill] sm:$0xff] }
 0x242   : > { %v1093_v39 = vsel %vm507_vm6, %v1080_v5, 0  ;;  %v1096_v10 = vsel %vm507_vm6, %v1081_v30, 0  ;;  %v980_v27 = vmul.f32 %v2066_v37, %v959_v24  ;;  %v981_v41 = vmul.f32 %v2066_v37, %v960_v48 }
 0x243   : > { %1104 = vmatpush.bf16.msra.mxu2 %v1093_v39  ;;  %1117 = vmatpush.bf16.msra.mxu3 %v1096_v10  ;;  %v932_v39 = vadd.f32 %v926_v46, %v877_v2  ;;  %v933_v10 = vadd.f32 %v927_v19, %v878_v61 }
 0x244   : > { %v944_v8 = vpop.permute.xlu1 %943  ;;  %v1003_v56 = vpop.permute.xlu0 %1002 }
 0x245   : > { %v954_v50 = vsel %vm445_vm0, %v944_v8, %v950_v59  ;;  %v957_v44 = vsel %vm445_vm0, %v950_v59, %v944_v8  ;;  %v934_v59 = vadd.f32 %v928_v60, %v879_v4  ;;  %v987_v38 = vadd.f32 %v981_v41, %v932_v39 }
 0x246   : > { %v961_v55 = vmul.f32 %v954_v50, %v1440_v52  ;;  %v962_v33 = vmul.f32 %v957_v44, %v1442_v53  ;;  %v931_v53 = vadd.f32 %v925_v25, %v876_v11 }
 0x248   : > { %v982_v9 = vmul.f32 %v2065_v62, %v961_v55  ;;  %v983_v45 = vmul.f32 %v2065_v62, %v962_v33  ;;  %v986_v40 = vadd.f32 %v980_v27, %v931_v53  ;;  %v1126_v33 = vld.sshfl [vmem:[#allocation1 + $0x8] sm:$0xff pattern:$0x75316420] }
 0x24a   : > { %v988_v58 = vadd.f32 %v982_v9, %v933_v10  ;;  %v989_v43 = vadd.f32 %v983_v45, %v934_v59 }
 0x24c   : > { %v997_v35 = vpop.permute.xlu1 %996  ;;  %v1028_v28 = vpop.permute.xlu0 %1027 }
 0x24d   : > { %v1008_v34 = vsel %vm466_vm7, %v997_v35, %v1003_v56  ;;  %v1011_v13 = vsel %vm466_vm7, %v1003_v56, %v997_v35 }
 0x24e   : > { %v1014_v23 = vmul.f32 %v1008_v34, %v1496_v15  ;;  %v1015_v49 = vmul.f32 %v1011_v13, %v2058_v3 }
 0x250   : > { %v1035_v22 = vmul.f32 %v2067_v16, %v1014_v23  ;;  %v1036_v32 = vmul.f32 %v2067_v16, %v1015_v49 }
 0x252   : > { %v1041_v35 = vadd.f32 %v1035_v22, %v986_v40 }
 0x254   : > { %v1005_v5 = vpop.permute.xlu1 %1004  ;;  %v1086_v54 = vpop.permute.xlu0 %1085 }
 0x255   : > { %v1009_v30 = vsel %vm466_vm7, %v999_v14, %v1005_v5  ;;  %v1012_v52 = vsel %vm466_vm7, %v1005_v5, %v999_v14 }
 0x256   : > { %v1016_v8 = vmul.f32 %v1009_v30, %v1496_v15  ;;  %v1017_v31 = vmul.f32 %v1012_v52, %v2058_v3  ;;  %v1058_v15 = vpop.permute.xlu2 %1057  ;;  %v1042_v3 = vadd.f32 %v1036_v32, %v987_v38 }
 0x258   : > { %v1037_v18 = vmul.f32 %v1028_v28, %v1016_v8  ;;  %v1038_v36 = vmul.f32 %v1028_v28, %v1017_v31 }
 0x25a   : > { %v1043_v26 = vadd.f32 %v1037_v18, %v988_v58  ;;  %v1044_v1 = vadd.f32 %v1038_v36, %v989_v43 }
 0x25c   : > { %v1053_v47 = vpop.permute.xlu1 %1052  ;;  %v1067_v20 = vadd.f32 %v1058_v15, %v1043_v26  ;;  %v1068_v50 = vadd.f32 %v1058_v15, %v1044_v1 }
 0x25d   : > { %v1065_v44 = vadd.f32 %v1053_v47, %v1041_v35  ;;  %v1066_v56 = vadd.f32 %v1053_v47, %v1042_v3 }
 0x25e   : > { %v1073_v12 = vmax.f32 %v1067_v20, 0.0  ;;  %v1074_v57 = vmax.f32 %v1068_v50, 0.0 }
 0x25f   : > { %v1071_v17 = vmax.f32 %v1065_v44, 0.0  ;;  %v1072_v42 = vmax.f32 %v1066_v56, 0.0 }
 0x261   : > { %v1078_v7 = vpack.c.bf16 %v1073_v12, %v1071_v17  ;;  %v1079_v63 = vpack.c.bf16 %v1074_v57, %v1072_v42 }
 0x263   : > { %1105 = vmatpush.bf16.msra.mxu2 %v1078_v7  ;;  %1118 = vmatpush.bf16.msra.mxu3 %v1079_v63 }
 0x266   : > { %1236 = vmatmul.msk.bf16.vlgmr.msra.gmra.mxu2 %vm1088_vm12, %v1077_v6  ;;  %1237 = vmatmul.msk.bf16.vlgmr.msra.gmra.mxu3 %vm1088_vm12, %v1077_v6 }
 0x2e9   : > { %v1107_v21 = vpop.f32.mrf.mxu2  ;;  %v1120_v55 = vpop.f32.mrf.mxu3 }
 0x2ea   : > { %v1108_v34 = vadd.f32 %v1107_v21, %v1086_v54  ;;  %v1121_v13 = vadd.f32 %v1120_v55, %v1086_v54 }
 0x2ec   : > { %v1129_v14 = vadd.f32 %v1125_v0, %v1108_v34  ;;  %v1130_v51 = vadd.f32 %v1126_v33, %v1121_v13 }
 0x2ee   : > { %v1132_v25 = vmax.f32 %v1130_v51, 0.0  ;;  %v1131_v46 = vmax.f32 %v1129_v14, 0.0 }
 0x2f0   : > { %v1135_v11 = vrot.slane %v1132_v25, 4 }
 0x2f1   : > { %v1109_v2 = vpop.f32.mrf.mxu2  ;;  %v1122_v29 = vpop.f32.mrf.mxu3 }
 0x2f2   : > { %v1136_v19 = vsel %vm507_vm6, %v1131_v46, %v1135_v11 }
 0x2f3   : > { %1138 = vst [vmem:[%s305_s20] sm:$0xff] %v1136_v19 }
 0x2f4 PF: > { %s18_s27 = sadd.s32 1, %s1268_s27  }
 0x2f5   : > { %p15_p4 = scmp.ge.s32.totalorder %s18_s27, 4  }
 0x2f7   :  { %17 = sbr.rel (!%p15_p4) target bundleno = 1 (0x1), region = 97 }

</bundles_post_ra>
